<compile_context>
chip_gen: v6e
topology: v6e:2x2x1
jax: 0.10.0
libtpu: 0.0.40
codegen_flags: <defaults>
</compile_context>

<pallas_src>
import jax
import jax.numpy as jnp
from jax.experimental import pallas as pl
from jax.experimental.pallas import tpu as pltpu

INPUT_DIM = 16
HIDDEN = 32
OUTPUT_DIM = 1
NUM_LAYERS = 3
BATCH = 2
SEQ = 8


def lstm_regressor_kernel(x_ref,
                          wih0_ref, whh0_ref, b0_ref,
                          wih1_ref, whh1_ref, b1_ref,
                          wih2_ref, whh2_ref, b2_ref,
                          fcw_ref, fcb_ref,
                          out_ref,
                          seq_a_ref, seq_b_ref):
    """Whole forward pass in one invocation (no grid; everything in VMEM).

    x_ref:   (T*B, D)  time-major flattened input rows.
    wih*:    (in, 4H)  pre-transposed input->gates weights.
    whh*:    (H, 4H)   pre-transposed hidden->gates weights.
    b*:      (1, 4H)   b_ih + b_hh folded together.
    fcw:     (1, H)    final linear weight row (OUTPUT_DIM == 1).
    fcb:     (1, 1)    final linear bias.
    seq_a/b: (T*B, H)  VMEM scratch for inter-layer activations (ping-pong).
    """
    B = out_ref.shape[0]
    T = x_ref.shape[0] // B
    H = whh0_ref.shape[0]

    def run_layer(seq, wih_l, b_l, whh_l, out_seq_ref):
        # (1) Hoisted input projection (+ folded bias) for ALL timesteps:
        #     one well-shaped (T*B, in) x (in, 4H) MXU matmul instead of T tiny
        #     dependent ones on the recurrent path.
        proj = jnp.dot(seq, wih_l, preferred_element_type=jnp.float32) + b_l  # (T*B, 4H)

        h = jnp.zeros((B, H), jnp.float32)   # h0 = 0 (matches torch.zeros init)
        c = jnp.zeros((B, H), jnp.float32)   # c0 = 0

        # (2) Fully unrolled time loop (T is static): only h @ whh remains
        #     inside the recurrence.
        for t in range(T):
            gates = proj[t * B:(t + 1) * B, :] + jnp.dot(
                h, whh_l, preferred_element_type=jnp.float32)          # (B, 4H)
            # (3) One sigmoid + one tanh over the full 128-lane gates tile,
            #     then 32-lane slices. PyTorch gate order: i, f, g, o.
            sg = jax.nn.sigmoid(gates)
            th = jnp.tanh(gates)
            i = sg[:, 0 * H:1 * H]
            f = sg[:, 1 * H:2 * H]
            g = th[:, 2 * H:3 * H]
            o = sg[:, 3 * H:4 * H]
            c = f * c + i * g
            h = o * jnp.tanh(c)
            if out_seq_ref is not None:
                out_seq_ref[t * B:(t + 1) * B, :] = h   # static-offset store
        return h

    # Layer 0 (input already time-major, (T*B, D)).
    run_layer(x_ref[...], wih0_ref[...], b0_ref[...], whh0_ref[...], seq_a_ref)
    # TODO(synk): nn.LSTM inter-layer dropout (p=0.4) is train-only; identity here (eval).
    run_layer(seq_a_ref[...], wih1_ref[...], b1_ref[...], whh1_ref[...], seq_b_ref)
    h_last = run_layer(seq_b_ref[...], wih2_ref[...], b2_ref[...], whh2_ref[...], None)

    # fc(out[:, -1, :]).  OUTPUT_DIM == 1 -> VPU multiply + XLU lane reduction
    # instead of an N=1 MXU matmul + masked store dependency at the tail.
    out_ref[...] = (jnp.sum(h_last * fcw_ref[...], axis=1, keepdims=True)
                    + fcb_ref[...])


def init_params(key):
    """Deterministic synthetic params with PyTorch-default shapes / uniform init."""
    k = 1.0 / jnp.sqrt(jnp.float32(HIDDEN))
    params = {}
    for l in range(NUM_LAYERS):
        in_dim = INPUT_DIM if l == 0 else HIDDEN
        key, k1, k2, k3, k4 = jax.random.split(key, 5)
        w_ih = jax.random.uniform(k1, (4 * HIDDEN, in_dim), jnp.float32, -k, k)
        w_hh = jax.random.uniform(k2, (4 * HIDDEN, HIDDEN), jnp.float32, -k, k)
        b_ih = jax.random.uniform(k3, (4 * HIDDEN,), jnp.float32, -k, k)
        b_hh = jax.random.uniform(k4, (4 * HIDDEN,), jnp.float32, -k, k)
        # Pre-transpose for the kernel; fold the two biases together.
        params[f"wih{l}"] = jnp.transpose(w_ih)                 # (in_dim, 4H)
        params[f"whh{l}"] = jnp.transpose(w_hh)                 # (H, 4H)
        params[f"b{l}"] = (b_ih + b_hh).reshape(1, 4 * HIDDEN)  # (1, 4H)
    key, k1, k2 = jax.random.split(key, 3)
    kf = 1.0 / jnp.sqrt(jnp.float32(HIDDEN))
    fc_w = jax.random.uniform(k1, (OUTPUT_DIM, HIDDEN), jnp.float32, -kf, kf)
    fc_b = jax.random.uniform(k2, (OUTPUT_DIM,), jnp.float32, -kf, kf)
    params["fcw"] = fc_w.reshape(OUTPUT_DIM, HIDDEN)             # (1, H) row
    params["fcb"] = fc_b.reshape(OUTPUT_DIM, OUTPUT_DIM)         # (1, 1)
    return params


@jax.jit
def lstm_regressor(x, params):
    """x: (B, T, D) batch-first, like the PyTorch module.  Returns (B, OUTPUT_DIM)."""
    B, T, D = x.shape
    # Flatten to time-major rows (tiny ~1 KB op) so every layer's hoisted input
    # projection is a single row-major (T*B, in) x (in, 4H) matmul.
    x_tm = jnp.transpose(x, (1, 0, 2)).reshape(T * B, D).astype(jnp.float32)

    args = [
        x_tm,
        params["wih0"], params["whh0"], params["b0"],
        params["wih1"], params["whh1"], params["b1"],
        params["wih2"], params["whh2"], params["b2"],
        params["fcw"], params["fcb"],
    ]
    vmem = pltpu.MemorySpace.VMEM
    return pl.pallas_call(
        lstm_regressor_kernel,
        out_shape=jax.ShapeDtypeStruct((B, OUTPUT_DIM), jnp.float32),
        in_specs=[pl.BlockSpec(memory_space=vmem) for _ in args],
        out_specs=pl.BlockSpec(memory_space=vmem),
        scratch_shapes=[pltpu.VMEM((T * B, HIDDEN), jnp.float32),
                        pltpu.VMEM((T * B, HIDDEN), jnp.float32)],
    )(*args)


if __name__ == "__main__":
    key = jax.random.PRNGKey(0)
    key_x, key_p = jax.random.split(key)
    x = jax.random.normal(key_x, (BATCH, SEQ, INPUT_DIM), jnp.float32)
    params = init_params(key_p)

    out = lstm_regressor(x, params)
    jax.block_until_ready(out)
    assert out.shape == (BATCH, OUTPUT_DIM)
    print("KERNEL_OK")
</pallas_src>

<mosaic_0001>
module attributes {stable_mosaic.version = 11 : i64} {
  func.func @lstm_regressor_kernel(%arg0: memref<16x16xf32, #tpu.memory_space<vmem>>, %arg1: memref<16x128xf32, #tpu.memory_space<vmem>>, %arg2: memref<32x128xf32, #tpu.memory_space<vmem>>, %arg3: memref<1x128xf32, #tpu.memory_space<vmem>>, %arg4: memref<32x128xf32, #tpu.memory_space<vmem>>, %arg5: memref<32x128xf32, #tpu.memory_space<vmem>>, %arg6: memref<1x128xf32, #tpu.memory_space<vmem>>, %arg7: memref<32x128xf32, #tpu.memory_space<vmem>>, %arg8: memref<32x128xf32, #tpu.memory_space<vmem>>, %arg9: memref<1x128xf32, #tpu.memory_space<vmem>>, %arg10: memref<1x32xf32, #tpu.memory_space<vmem>>, %arg11: memref<1x1xf32, #tpu.memory_space<vmem>>, %arg12: memref<2x1xf32, #tpu.memory_space<vmem>>, %arg13: memref<16x32xf32, #tpu.memory_space<vmem>>, %arg14: memref<16x32xf32, #tpu.memory_space<vmem>>) attributes {dimension_semantics = [], scalar_prefetch = 0 : i64, scratch_operands = 2 : i64, tpu.core_type = #tpu.core_type<tc>} {
    %c0 = arith.constant 0 : index
    %c0_0 = arith.constant 0 : index
    %0 = vector.load %arg0[%c0, %c0_0] : memref<16x16xf32, #tpu.memory_space<vmem>>, vector<16x16xf32>
    %c0_1 = arith.constant 0 : index
    %c0_2 = arith.constant 0 : index
    %1 = vector.load %arg1[%c0_1, %c0_2] : memref<16x128xf32, #tpu.memory_space<vmem>>, vector<16x128xf32>
    %c0_3 = arith.constant 0 : index
    %c0_4 = arith.constant 0 : index
    %2 = vector.load %arg3[%c0_3, %c0_4] : memref<1x128xf32, #tpu.memory_space<vmem>>, vector<1x128xf32>
    %c0_5 = arith.constant 0 : index
    %c0_6 = arith.constant 0 : index
    %3 = vector.load %arg2[%c0_5, %c0_6] : memref<32x128xf32, #tpu.memory_space<vmem>>, vector<32x128xf32>
    %cst = arith.constant dense<0.000000e+00> : vector<16x128xf32>
    %4 = tpu.matmul %0, %1, %cst {dimension_numbers = #tpu.dot_dimension_numbers<[1], [0], [0], [1], [0, 0, 1, 1], [], []>} : vector<16x16xf32>, vector<16x128xf32>, vector<16x128xf32> -> vector<16x128xf32>
    %5 = vector.broadcast %2 : vector<1x128xf32> to vector<16x128xf32>
    %6 = arith.addf %4, %5 : vector<16x128xf32>
    %cst_7 = arith.constant 0.000000e+00 : f32
    %7 = vector.broadcast %cst_7 : f32 to vector<2x32xf32>
    %cst_8 = arith.constant 0.000000e+00 : f32
    %8 = vector.broadcast %cst_8 : f32 to vector<2x32xf32>
    %9 = vector.extract_strided_slice %6 {offsets = [0, 0], sizes = [2, 128], strides = [1, 1]} : vector<16x128xf32> to vector<2x128xf32>
    %cst_9 = arith.constant dense<0.000000e+00> : vector<2x128xf32>
    %10 = tpu.matmul %7, %3, %cst_9 {dimension_numbers = #tpu.dot_dimension_numbers<[1], [0], [0], [1], [0, 0, 1, 1], [], []>} : vector<2x32xf32>, vector<32x128xf32>, vector<2x128xf32> -> vector<2x128xf32>
    %11 = arith.addf %9, %10 : vector<2x128xf32>
    %12 = arith.negf %11 : vector<2x128xf32>
    %13 = math.exp %12 : vector<2x128xf32>
    %cst_10 = arith.constant 1.000000e+00 : f32
    %14 = vector.broadcast %cst_10 : f32 to vector<2x128xf32>
    %15 = arith.addf %14, %13 : vector<2x128xf32>
    %16 = arith.divf %14, %15 : vector<2x128xf32>
    %17 = math.tanh %11 : vector<2x128xf32>
    %18 = vector.extract_strided_slice %16 {offsets = [0, 0], sizes = [2, 32], strides = [1, 1]} : vector<2x128xf32> to vector<2x32xf32>
    %19 = vector.extract_strided_slice %16 {offsets = [0, 32], sizes = [2, 32], strides = [1, 1]} : vector<2x128xf32> to vector<2x32xf32>
    %20 = vector.extract_strided_slice %17 {offsets = [0, 64], sizes = [2, 32], strides = [1, 1]} : vector<2x128xf32> to vector<2x32xf32>
    %21 = vector.extract_strided_slice %16 {offsets = [0, 96], sizes = [2, 32], strides = [1, 1]} : vector<2x128xf32> to vector<2x32xf32>
    %22 = arith.mulf %19, %8 : vector<2x32xf32>
    %23 = arith.mulf %18, %20 : vector<2x32xf32>
    %24 = arith.addf %22, %23 : vector<2x32xf32>
    %25 = math.tanh %24 : vector<2x32xf32>
    %26 = arith.mulf %21, %25 : vector<2x32xf32>
    %c0_11 = arith.constant 0 : index
    %c0_12 = arith.constant 0 : index
    %27 = vector.load %arg13[%c0_11, %c0_12] : memref<16x32xf32, #tpu.memory_space<vmem>>, vector<2x32xf32>
    tpu.vector_store %arg13[%c0_11, %c0_12], %26 {strides = array<i32>} : memref<16x32xf32, #tpu.memory_space<vmem>>, vector<2x32xf32>,
    %28 = vector.extract_strided_slice %6 {offsets = [2, 0], sizes = [2, 128], strides = [1, 1]} : vector<16x128xf32> to vector<2x128xf32>
    %cst_13 = arith.constant dense<0.000000e+00> : vector<2x128xf32>
    %29 = tpu.matmul %26, %3, %cst_13 {dimension_numbers = #tpu.dot_dimension_numbers<[1], [0], [0], [1], [0, 0, 1, 1], [], []>} : vector<2x32xf32>, vector<32x128xf32>, vector<2x128xf32> -> vector<2x128xf32>
    %30 = arith.addf %28, %29 : vector<2x128xf32>
    %31 = arith.negf %30 : vector<2x128xf32>
    %32 = math.exp %31 : vector<2x128xf32>
    %cst_14 = arith.constant 1.000000e+00 : f32
    %33 = vector.broadcast %cst_14 : f32 to vector<2x128xf32>
    %34 = arith.addf %33, %32 : vector<2x128xf32>
    %35 = arith.divf %33, %34 : vector<2x128xf32>
    %36 = math.tanh %30 : vector<2x128xf32>
    %37 = vector.extract_strided_slice %35 {offsets = [0, 0], sizes = [2, 32], strides = [1, 1]} : vector<2x128xf32> to vector<2x32xf32>
    %38 = vector.extract_strided_slice %35 {offsets = [0, 32], sizes = [2, 32], strides = [1, 1]} : vector<2x128xf32> to vector<2x32xf32>
    %39 = vector.extract_strided_slice %36 {offsets = [0, 64], sizes = [2, 32], strides = [1, 1]} : vector<2x128xf32> to vector<2x32xf32>
    %40 = vector.extract_strided_slice %35 {offsets = [0, 96], sizes = [2, 32], strides = [1, 1]} : vector<2x128xf32> to vector<2x32xf32>
    %41 = arith.mulf %38, %24 : vector<2x32xf32>
    %42 = arith.mulf %37, %39 : vector<2x32xf32>
    %43 = arith.addf %41, %42 : vector<2x32xf32>
    %44 = math.tanh %43 : vector<2x32xf32>
    %45 = arith.mulf %40, %44 : vector<2x32xf32>
    %c2 = arith.constant 2 : index
    %c0_15 = arith.constant 0 : index
    %46 = vector.load %arg13[%c2, %c0_15] : memref<16x32xf32, #tpu.memory_space<vmem>>, vector<2x32xf32>
    tpu.vector_store %arg13[%c2, %c0_15], %45 {strides = array<i32>} : memref<16x32xf32, #tpu.memory_space<vmem>>, vector<2x32xf32>,
    %47 = vector.extract_strided_slice %6 {offsets = [4, 0], sizes = [2, 128], strides = [1, 1]} : vector<16x128xf32> to vector<2x128xf32>
    %cst_16 = arith.constant dense<0.000000e+00> : vector<2x128xf32>
    %48 = tpu.matmul %45, %3, %cst_16 {dimension_numbers = #tpu.dot_dimension_numbers<[1], [0], [0], [1], [0, 0, 1, 1], [], []>} : vector<2x32xf32>, vector<32x128xf32>, vector<2x128xf32> -> vector<2x128xf32>
    %49 = arith.addf %47, %48 : vector<2x128xf32>
    %50 = arith.negf %49 : vector<2x128xf32>
    %51 = math.exp %50 : vector<2x128xf32>
    %cst_17 = arith.constant 1.000000e+00 : f32
    %52 = vector.broadcast %cst_17 : f32 to vector<2x128xf32>
    %53 = arith.addf %52, %51 : vector<2x128xf32>
    %54 = arith.divf %52, %53 : vector<2x128xf32>
    %55 = math.tanh %49 : vector<2x128xf32>
    %56 = vector.extract_strided_slice %54 {offsets = [0, 0], sizes = [2, 32], strides = [1, 1]} : vector<2x128xf32> to vector<2x32xf32>
    %57 = vector.extract_strided_slice %54 {offsets = [0, 32], sizes = [2, 32], strides = [1, 1]} : vector<2x128xf32> to vector<2x32xf32>
    %58 = vector.extract_strided_slice %55 {offsets = [0, 64], sizes = [2, 32], strides = [1, 1]} : vector<2x128xf32> to vector<2x32xf32>
    %59 = vector.extract_strided_slice %54 {offsets = [0, 96], sizes = [2, 32], strides = [1, 1]} : vector<2x128xf32> to vector<2x32xf32>
    %60 = arith.mulf %57, %43 : vector<2x32xf32>
    %61 = arith.mulf %56, %58 : vector<2x32xf32>
    %62 = arith.addf %60, %61 : vector<2x32xf32>
    %63 = math.tanh %62 : vector<2x32xf32>
    %64 = arith.mulf %59, %63 : vector<2x32xf32>
    %c4 = arith.constant 4 : index
    %c0_18 = arith.constant 0 : index
    %65 = vector.load %arg13[%c4, %c0_18] : memref<16x32xf32, #tpu.memory_space<vmem>>, vector<2x32xf32>
    tpu.vector_store %arg13[%c4, %c0_18], %64 {strides = array<i32>} : memref<16x32xf32, #tpu.memory_space<vmem>>, vector<2x32xf32>,
    %66 = vector.extract_strided_slice %6 {offsets = [6, 0], sizes = [2, 128], strides = [1, 1]} : vector<16x128xf32> to vector<2x128xf32>
    %cst_19 = arith.constant dense<0.000000e+00> : vector<2x128xf32>
    %67 = tpu.matmul %64, %3, %cst_19 {dimension_numbers = #tpu.dot_dimension_numbers<[1], [0], [0], [1], [0, 0, 1, 1], [], []>} : vector<2x32xf32>, vector<32x128xf32>, vector<2x128xf32> -> vector<2x128xf32>
    %68 = arith.addf %66, %67 : vector<2x128xf32>
    %69 = arith.negf %68 : vector<2x128xf32>
    %70 = math.exp %69 : vector<2x128xf32>
    %cst_20 = arith.constant 1.000000e+00 : f32
    %71 = vector.broadcast %cst_20 : f32 to vector<2x128xf32>
    %72 = arith.addf %71, %70 : vector<2x128xf32>
    %73 = arith.divf %71, %72 : vector<2x128xf32>
    %74 = math.tanh %68 : vector<2x128xf32>
    %75 = vector.extract_strided_slice %73 {offsets = [0, 0], sizes = [2, 32], strides = [1, 1]} : vector<2x128xf32> to vector<2x32xf32>
    %76 = vector.extract_strided_slice %73 {offsets = [0, 32], sizes = [2, 32], strides = [1, 1]} : vector<2x128xf32> to vector<2x32xf32>
    %77 = vector.extract_strided_slice %74 {offsets = [0, 64], sizes = [2, 32], strides = [1, 1]} : vector<2x128xf32> to vector<2x32xf32>
    %78 = vector.extract_strided_slice %73 {offsets = [0, 96], sizes = [2, 32], strides = [1, 1]} : vector<2x128xf32> to vector<2x32xf32>
    %79 = arith.mulf %76, %62 : vector<2x32xf32>
    %80 = arith.mulf %75, %77 : vector<2x32xf32>
    %81 = arith.addf %79, %80 : vector<2x32xf32>
    %82 = math.tanh %81 : vector<2x32xf32>
    %83 = arith.mulf %78, %82 : vector<2x32xf32>
    %c6 = arith.constant 6 : index
    %c0_21 = arith.constant 0 : index
    %84 = vector.load %arg13[%c6, %c0_21] : memref<16x32xf32, #tpu.memory_space<vmem>>, vector<2x32xf32>
    tpu.vector_store %arg13[%c6, %c0_21], %83 {strides = array<i32>} : memref<16x32xf32, #tpu.memory_space<vmem>>, vector<2x32xf32>,
    %85 = vector.extract_strided_slice %6 {offsets = [8, 0], sizes = [2, 128], strides = [1, 1]} : vector<16x128xf32> to vector<2x128xf32>
    %cst_22 = arith.constant dense<0.000000e+00> : vector<2x128xf32>
    %86 = tpu.matmul %83, %3, %cst_22 {dimension_numbers = #tpu.dot_dimension_numbers<[1], [0], [0], [1], [0, 0, 1, 1], [], []>} : vector<2x32xf32>, vector<32x128xf32>, vector<2x128xf32> -> vector<2x128xf32>
    %87 = arith.addf %85, %86 : vector<2x128xf32>
    %88 = arith.negf %87 : vector<2x128xf32>
    %89 = math.exp %88 : vector<2x128xf32>
    %cst_23 = arith.constant 1.000000e+00 : f32
    %90 = vector.broadcast %cst_23 : f32 to vector<2x128xf32>
    %91 = arith.addf %90, %89 : vector<2x128xf32>
    %92 = arith.divf %90, %91 : vector<2x128xf32>
    %93 = math.tanh %87 : vector<2x128xf32>
    %94 = vector.extract_strided_slice %92 {offsets = [0, 0], sizes = [2, 32], strides = [1, 1]} : vector<2x128xf32> to vector<2x32xf32>
    %95 = vector.extract_strided_slice %92 {offsets = [0, 32], sizes = [2, 32], strides = [1, 1]} : vector<2x128xf32> to vector<2x32xf32>
    %96 = vector.extract_strided_slice %93 {offsets = [0, 64], sizes = [2, 32], strides = [1, 1]} : vector<2x128xf32> to vector<2x32xf32>
    %97 = vector.extract_strided_slice %92 {offsets = [0, 96], sizes = [2, 32], strides = [1, 1]} : vector<2x128xf32> to vector<2x32xf32>
    %98 = arith.mulf %95, %81 : vector<2x32xf32>
    %99 = arith.mulf %94, %96 : vector<2x32xf32>
    %100 = arith.addf %98, %99 : vector<2x32xf32>
    %101 = math.tanh %100 : vector<2x32xf32>
    %102 = arith.mulf %97, %101 : vector<2x32xf32>
    %c8 = arith.constant 8 : index
    %c0_24 = arith.constant 0 : index
    %103 = vector.load %arg13[%c8, %c0_24] : memref<16x32xf32, #tpu.memory_space<vmem>>, vector<2x32xf32>
    tpu.vector_store %arg13[%c8, %c0_24], %102 {strides = array<i32>} : memref<16x32xf32, #tpu.memory_space<vmem>>, vector<2x32xf32>,
    %104 = vector.extract_strided_slice %6 {offsets = [10, 0], sizes = [2, 128], strides = [1, 1]} : vector<16x128xf32> to vector<2x128xf32>
    %cst_25 = arith.constant dense<0.000000e+00> : vector<2x128xf32>
    %105 = tpu.matmul %102, %3, %cst_25 {dimension_numbers = #tpu.dot_dimension_numbers<[1], [0], [0], [1], [0, 0, 1, 1], [], []>} : vector<2x32xf32>, vector<32x128xf32>, vector<2x128xf32> -> vector<2x128xf32>
    %106 = arith.addf %104, %105 : vector<2x128xf32>
    %107 = arith.negf %106 : vector<2x128xf32>
    %108 = math.exp %107 : vector<2x128xf32>
    %cst_26 = arith.constant 1.000000e+00 : f32
    %109 = vector.broadcast %cst_26 : f32 to vector<2x128xf32>
    %110 = arith.addf %109, %108 : vector<2x128xf32>
    %111 = arith.divf %109, %110 : vector<2x128xf32>
    %112 = math.tanh %106 : vector<2x128xf32>
    %113 = vector.extract_strided_slice %111 {offsets = [0, 0], sizes = [2, 32], strides = [1, 1]} : vector<2x128xf32> to vector<2x32xf32>
    %114 = vector.extract_strided_slice %111 {offsets = [0, 32], sizes = [2, 32], strides = [1, 1]} : vector<2x128xf32> to vector<2x32xf32>
    %115 = vector.extract_strided_slice %112 {offsets = [0, 64], sizes = [2, 32], strides = [1, 1]} : vector<2x128xf32> to vector<2x32xf32>
    %116 = vector.extract_strided_slice %111 {offsets = [0, 96], sizes = [2, 32], strides = [1, 1]} : vector<2x128xf32> to vector<2x32xf32>
    %117 = arith.mulf %114, %100 : vector<2x32xf32>
    %118 = arith.mulf %113, %115 : vector<2x32xf32>
    %119 = arith.addf %117, %118 : vector<2x32xf32>
    %120 = math.tanh %119 : vector<2x32xf32>
    %121 = arith.mulf %116, %120 : vector<2x32xf32>
    %c10 = arith.constant 10 : index
    %c0_27 = arith.constant 0 : index
    %122 = vector.load %arg13[%c10, %c0_27] : memref<16x32xf32, #tpu.memory_space<vmem>>, vector<2x32xf32>
    tpu.vector_store %arg13[%c10, %c0_27], %121 {strides = array<i32>} : memref<16x32xf32, #tpu.memory_space<vmem>>, vector<2x32xf32>,
    %123 = vector.extract_strided_slice %6 {offsets = [12, 0], sizes = [2, 128], strides = [1, 1]} : vector<16x128xf32> to vector<2x128xf32>
    %cst_28 = arith.constant dense<0.000000e+00> : vector<2x128xf32>
    %124 = tpu.matmul %121, %3, %cst_28 {dimension_numbers = #tpu.dot_dimension_numbers<[1], [0], [0], [1], [0, 0, 1, 1], [], []>} : vector<2x32xf32>, vector<32x128xf32>, vector<2x128xf32> -> vector<2x128xf32>
    %125 = arith.addf %123, %124 : vector<2x128xf32>
    %126 = arith.negf %125 : vector<2x128xf32>
    %127 = math.exp %126 : vector<2x128xf32>
    %cst_29 = arith.constant 1.000000e+00 : f32
    %128 = vector.broadcast %cst_29 : f32 to vector<2x128xf32>
    %129 = arith.addf %128, %127 : vector<2x128xf32>
    %130 = arith.divf %128, %129 : vector<2x128xf32>
    %131 = math.tanh %125 : vector<2x128xf32>
    %132 = vector.extract_strided_slice %130 {offsets = [0, 0], sizes = [2, 32], strides = [1, 1]} : vector<2x128xf32> to vector<2x32xf32>
    %133 = vector.extract_strided_slice %130 {offsets = [0, 32], sizes = [2, 32], strides = [1, 1]} : vector<2x128xf32> to vector<2x32xf32>
    %134 = vector.extract_strided_slice %131 {offsets = [0, 64], sizes = [2, 32], strides = [1, 1]} : vector<2x128xf32> to vector<2x32xf32>
    %135 = vector.extract_strided_slice %130 {offsets = [0, 96], sizes = [2, 32], strides = [1, 1]} : vector<2x128xf32> to vector<2x32xf32>
    %136 = arith.mulf %133, %119 : vector<2x32xf32>
    %137 = arith.mulf %132, %134 : vector<2x32xf32>
    %138 = arith.addf %136, %137 : vector<2x32xf32>
    %139 = math.tanh %138 : vector<2x32xf32>
    %140 = arith.mulf %135, %139 : vector<2x32xf32>
    %c12 = arith.constant 12 : index
    %c0_30 = arith.constant 0 : index
    %141 = vector.load %arg13[%c12, %c0_30] : memref<16x32xf32, #tpu.memory_space<vmem>>, vector<2x32xf32>
    tpu.vector_store %arg13[%c12, %c0_30], %140 {strides = array<i32>} : memref<16x32xf32, #tpu.memory_space<vmem>>, vector<2x32xf32>,
    %142 = vector.extract_strided_slice %6 {offsets = [14, 0], sizes = [2, 128], strides = [1, 1]} : vector<16x128xf32> to vector<2x128xf32>
    %cst_31 = arith.constant dense<0.000000e+00> : vector<2x128xf32>
    %143 = tpu.matmul %140, %3, %cst_31 {dimension_numbers = #tpu.dot_dimension_numbers<[1], [0], [0], [1], [0, 0, 1, 1], [], []>} : vector<2x32xf32>, vector<32x128xf32>, vector<2x128xf32> -> vector<2x128xf32>
    %144 = arith.addf %142, %143 : vector<2x128xf32>
    %145 = arith.negf %144 : vector<2x128xf32>
    %146 = math.exp %145 : vector<2x128xf32>
    %cst_32 = arith.constant 1.000000e+00 : f32
    %147 = vector.broadcast %cst_32 : f32 to vector<2x128xf32>
    %148 = arith.addf %147, %146 : vector<2x128xf32>
    %149 = arith.divf %147, %148 : vector<2x128xf32>
    %150 = math.tanh %144 : vector<2x128xf32>
    %151 = vector.extract_strided_slice %149 {offsets = [0, 0], sizes = [2, 32], strides = [1, 1]} : vector<2x128xf32> to vector<2x32xf32>
    %152 = vector.extract_strided_slice %149 {offsets = [0, 32], sizes = [2, 32], strides = [1, 1]} : vector<2x128xf32> to vector<2x32xf32>
    %153 = vector.extract_strided_slice %150 {offsets = [0, 64], sizes = [2, 32], strides = [1, 1]} : vector<2x128xf32> to vector<2x32xf32>
    %154 = vector.extract_strided_slice %149 {offsets = [0, 96], sizes = [2, 32], strides = [1, 1]} : vector<2x128xf32> to vector<2x32xf32>
    %155 = arith.mulf %152, %138 : vector<2x32xf32>
    %156 = arith.mulf %151, %153 : vector<2x32xf32>
    %157 = arith.addf %155, %156 : vector<2x32xf32>
    %158 = math.tanh %157 : vector<2x32xf32>
    %159 = arith.mulf %154, %158 : vector<2x32xf32>
    %c14 = arith.constant 14 : index
    %c0_33 = arith.constant 0 : index
    %160 = vector.load %arg13[%c14, %c0_33] : memref<16x32xf32, #tpu.memory_space<vmem>>, vector<2x32xf32>
    tpu.vector_store %arg13[%c14, %c0_33], %159 {strides = array<i32>} : memref<16x32xf32, #tpu.memory_space<vmem>>, vector<2x32xf32>,
    %c0_34 = arith.constant 0 : index
    %c0_35 = arith.constant 0 : index
    %161 = vector.load %arg13[%c0_34, %c0_35] : memref<16x32xf32, #tpu.memory_space<vmem>>, vector<16x32xf32>
    %c0_36 = arith.constant 0 : index
    %c0_37 = arith.constant 0 : index
    %162 = vector.load %arg4[%c0_36, %c0_37] : memref<32x128xf32, #tpu.memory_space<vmem>>, vector<32x128xf32>
    %c0_38 = arith.constant 0 : index
    %c0_39 = arith.constant 0 : index
    %163 = vector.load %arg6[%c0_38, %c0_39] : memref<1x128xf32, #tpu.memory_space<vmem>>, vector<1x128xf32>
    %c0_40 = arith.constant 0 : index
    %c0_41 = arith.constant 0 : index
    %164 = vector.load %arg5[%c0_40, %c0_41] : memref<32x128xf32, #tpu.memory_space<vmem>>, vector<32x128xf32>
    %cst_42 = arith.constant dense<0.000000e+00> : vector<16x128xf32>
    %165 = tpu.matmul %161, %162, %cst_42 {dimension_numbers = #tpu.dot_dimension_numbers<[1], [0], [0], [1], [0, 0, 1, 1], [], []>} : vector<16x32xf32>, vector<32x128xf32>, vector<16x128xf32> -> vector<16x128xf32>
    %166 = vector.broadcast %163 : vector<1x128xf32> to vector<16x128xf32>
    %167 = arith.addf %165, %166 : vector<16x128xf32>
    %cst_43 = arith.constant 0.000000e+00 : f32
    %168 = vector.broadcast %cst_43 : f32 to vector<2x32xf32>
    %cst_44 = arith.constant 0.000000e+00 : f32
    %169 = vector.broadcast %cst_44 : f32 to vector<2x32xf32>
    %170 = vector.extract_strided_slice %167 {offsets = [0, 0], sizes = [2, 128], strides = [1, 1]} : vector<16x128xf32> to vector<2x128xf32>
    %cst_45 = arith.constant dense<0.000000e+00> : vector<2x128xf32>
    %171 = tpu.matmul %168, %164, %cst_45 {dimension_numbers = #tpu.dot_dimension_numbers<[1], [0], [0], [1], [0, 0, 1, 1], [], []>} : vector<2x32xf32>, vector<32x128xf32>, vector<2x128xf32> -> vector<2x128xf32>
    %172 = arith.addf %170, %171 : vector<2x128xf32>
    %173 = arith.negf %172 : vector<2x128xf32>
    %174 = math.exp %173 : vector<2x128xf32>
    %cst_46 = arith.constant 1.000000e+00 : f32
    %175 = vector.broadcast %cst_46 : f32 to vector<2x128xf32>
    %176 = arith.addf %175, %174 : vector<2x128xf32>
    %177 = arith.divf %175, %176 : vector<2x128xf32>
    %178 = math.tanh %172 : vector<2x128xf32>
    %179 = vector.extract_strided_slice %177 {offsets = [0, 0], sizes = [2, 32], strides = [1, 1]} : vector<2x128xf32> to vector<2x32xf32>
    %180 = vector.extract_strided_slice %177 {offsets = [0, 32], sizes = [2, 32], strides = [1, 1]} : vector<2x128xf32> to vector<2x32xf32>
    %181 = vector.extract_strided_slice %178 {offsets = [0, 64], sizes = [2, 32], strides = [1, 1]} : vector<2x128xf32> to vector<2x32xf32>
    %182 = vector.extract_strided_slice %177 {offsets = [0, 96], sizes = [2, 32], strides = [1, 1]} : vector<2x128xf32> to vector<2x32xf32>
    %183 = arith.mulf %180, %169 : vector<2x32xf32>
    %184 = arith.mulf %179, %181 : vector<2x32xf32>
    %185 = arith.addf %183, %184 : vector<2x32xf32>
    %186 = math.tanh %185 : vector<2x32xf32>
    %187 = arith.mulf %182, %186 : vector<2x32xf32>
    %c0_47 = arith.constant 0 : index
    %c0_48 = arith.constant 0 : index
    %188 = vector.load %arg14[%c0_47, %c0_48] : memref<16x32xf32, #tpu.memory_space<vmem>>, vector<2x32xf32>
    tpu.vector_store %arg14[%c0_47, %c0_48], %187 {strides = array<i32>} : memref<16x32xf32, #tpu.memory_space<vmem>>, vector<2x32xf32>,
    %189 = vector.extract_strided_slice %167 {offsets = [2, 0], sizes = [2, 128], strides = [1, 1]} : vector<16x128xf32> to vector<2x128xf32>
    %cst_49 = arith.constant dense<0.000000e+00> : vector<2x128xf32>
    %190 = tpu.matmul %187, %164, %cst_49 {dimension_numbers = #tpu.dot_dimension_numbers<[1], [0], [0], [1], [0, 0, 1, 1], [], []>} : vector<2x32xf32>, vector<32x128xf32>, vector<2x128xf32> -> vector<2x128xf32>
    %191 = arith.addf %189, %190 : vector<2x128xf32>
    %192 = arith.negf %191 : vector<2x128xf32>
    %193 = math.exp %192 : vector<2x128xf32>
    %cst_50 = arith.constant 1.000000e+00 : f32
    %194 = vector.broadcast %cst_50 : f32 to vector<2x128xf32>
    %195 = arith.addf %194, %193 : vector<2x128xf32>
    %196 = arith.divf %194, %195 : vector<2x128xf32>
    %197 = math.tanh %191 : vector<2x128xf32>
    %198 = vector.extract_strided_slice %196 {offsets = [0, 0], sizes = [2, 32], strides = [1, 1]} : vector<2x128xf32> to vector<2x32xf32>
    %199 = vector.extract_strided_slice %196 {offsets = [0, 32], sizes = [2, 32], strides = [1, 1]} : vector<2x128xf32> to vector<2x32xf32>
    %200 = vector.extract_strided_slice %197 {offsets = [0, 64], sizes = [2, 32], strides = [1, 1]} : vector<2x128xf32> to vector<2x32xf32>
    %201 = vector.extract_strided_slice %196 {offsets = [0, 96], sizes = [2, 32], strides = [1, 1]} : vector<2x128xf32> to vector<2x32xf32>
    %202 = arith.mulf %199, %185 : vector<2x32xf32>
    %203 = arith.mulf %198, %200 : vector<2x32xf32>
    %204 = arith.addf %202, %203 : vector<2x32xf32>
    %205 = math.tanh %204 : vector<2x32xf32>
    %206 = arith.mulf %201, %205 : vector<2x32xf32>
    %c2_51 = arith.constant 2 : index
    %c0_52 = arith.constant 0 : index
    %207 = vector.load %arg14[%c2_51, %c0_52] : memref<16x32xf32, #tpu.memory_space<vmem>>, vector<2x32xf32>
    tpu.vector_store %arg14[%c2_51, %c0_52], %206 {strides = array<i32>} : memref<16x32xf32, #tpu.memory_space<vmem>>, vector<2x32xf32>,
    %208 = vector.extract_strided_slice %167 {offsets = [4, 0], sizes = [2, 128], strides = [1, 1]} : vector<16x128xf32> to vector<2x128xf32>
    %cst_53 = arith.constant dense<0.000000e+00> : vector<2x128xf32>
    %209 = tpu.matmul %206, %164, %cst_53 {dimension_numbers = #tpu.dot_dimension_numbers<[1], [0], [0], [1], [0, 0, 1, 1], [], []>} : vector<2x32xf32>, vector<32x128xf32>, vector<2x128xf32> -> vector<2x128xf32>
    %210 = arith.addf %208, %209 : vector<2x128xf32>
    %211 = arith.negf %210 : vector<2x128xf32>
    %212 = math.exp %211 : vector<2x128xf32>
    %cst_54 = arith.constant 1.000000e+00 : f32
    %213 = vector.broadcast %cst_54 : f32 to vector<2x128xf32>
    %214 = arith.addf %213, %212 : vector<2x128xf32>
    %215 = arith.divf %213, %214 : vector<2x128xf32>
    %216 = math.tanh %210 : vector<2x128xf32>
    %217 = vector.extract_strided_slice %215 {offsets = [0, 0], sizes = [2, 32], strides = [1, 1]} : vector<2x128xf32> to vector<2x32xf32>
    %218 = vector.extract_strided_slice %215 {offsets = [0, 32], sizes = [2, 32], strides = [1, 1]} : vector<2x128xf32> to vector<2x32xf32>
    %219 = vector.extract_strided_slice %216 {offsets = [0, 64], sizes = [2, 32], strides = [1, 1]} : vector<2x128xf32> to vector<2x32xf32>
    %220 = vector.extract_strided_slice %215 {offsets = [0, 96], sizes = [2, 32], strides = [1, 1]} : vector<2x128xf32> to vector<2x32xf32>
    %221 = arith.mulf %218, %204 : vector<2x32xf32>
    %222 = arith.mulf %217, %219 : vector<2x32xf32>
    %223 = arith.addf %221, %222 : vector<2x32xf32>
    %224 = math.tanh %223 : vector<2x32xf32>
    %225 = arith.mulf %220, %224 : vector<2x32xf32>
    %c4_55 = arith.constant 4 : index
    %c0_56 = arith.constant 0 : index
    %226 = vector.load %arg14[%c4_55, %c0_56] : memref<16x32xf32, #tpu.memory_space<vmem>>, vector<2x32xf32>
    tpu.vector_store %arg14[%c4_55, %c0_56], %225 {strides = array<i32>} : memref<16x32xf32, #tpu.memory_space<vmem>>, vector<2x32xf32>,
    %227 = vector.extract_strided_slice %167 {offsets = [6, 0], sizes = [2, 128], strides = [1, 1]} : vector<16x128xf32> to vector<2x128xf32>
    %cst_57 = arith.constant dense<0.000000e+00> : vector<2x128xf32>
    %228 = tpu.matmul %225, %164, %cst_57 {dimension_numbers = #tpu.dot_dimension_numbers<[1], [0], [0], [1], [0, 0, 1, 1], [], []>} : vector<2x32xf32>, vector<32x128xf32>, vector<2x128xf32> -> vector<2x128xf32>
    %229 = arith.addf %227, %228 : vector<2x128xf32>
    %230 = arith.negf %229 : vector<2x128xf32>
    %231 = math.exp %230 : vector<2x128xf32>
    %cst_58 = arith.constant 1.000000e+00 : f32
    %232 = vector.broadcast %cst_58 : f32 to vector<2x128xf32>
    %233 = arith.addf %232, %231 : vector<2x128xf32>
    %234 = arith.divf %232, %233 : vector<2x128xf32>
    %235 = math.tanh %229 : vector<2x128xf32>
    %236 = vector.extract_strided_slice %234 {offsets = [0, 0], sizes = [2, 32], strides = [1, 1]} : vector<2x128xf32> to vector<2x32xf32>
    %237 = vector.extract_strided_slice %234 {offsets = [0, 32], sizes = [2, 32], strides = [1, 1]} : vector<2x128xf32> to vector<2x32xf32>
    %238 = vector.extract_strided_slice %235 {offsets = [0, 64], sizes = [2, 32], strides = [1, 1]} : vector<2x128xf32> to vector<2x32xf32>
    %239 = vector.extract_strided_slice %234 {offsets = [0, 96], sizes = [2, 32], strides = [1, 1]} : vector<2x128xf32> to vector<2x32xf32>
    %240 = arith.mulf %237, %223 : vector<2x32xf32>
    %241 = arith.mulf %236, %238 : vector<2x32xf32>
    %242 = arith.addf %240, %241 : vector<2x32xf32>
    %243 = math.tanh %242 : vector<2x32xf32>
    %244 = arith.mulf %239, %243 : vector<2x32xf32>
    %c6_59 = arith.constant 6 : index
    %c0_60 = arith.constant 0 : index
    %245 = vector.load %arg14[%c6_59, %c0_60] : memref<16x32xf32, #tpu.memory_space<vmem>>, vector<2x32xf32>
    tpu.vector_store %arg14[%c6_59, %c0_60], %244 {strides = array<i32>} : memref<16x32xf32, #tpu.memory_space<vmem>>, vector<2x32xf32>,
    %246 = vector.extract_strided_slice %167 {offsets = [8, 0], sizes = [2, 128], strides = [1, 1]} : vector<16x128xf32> to vector<2x128xf32>
    %cst_61 = arith.constant dense<0.000000e+00> : vector<2x128xf32>
    %247 = tpu.matmul %244, %164, %cst_61 {dimension_numbers = #tpu.dot_dimension_numbers<[1], [0], [0], [1], [0, 0, 1, 1], [], []>} : vector<2x32xf32>, vector<32x128xf32>, vector<2x128xf32> -> vector<2x128xf32>
    %248 = arith.addf %246, %247 : vector<2x128xf32>
    %249 = arith.negf %248 : vector<2x128xf32>
    %250 = math.exp %249 : vector<2x128xf32>
    %cst_62 = arith.constant 1.000000e+00 : f32
    %251 = vector.broadcast %cst_62 : f32 to vector<2x128xf32>
    %252 = arith.addf %251, %250 : vector<2x128xf32>
    %253 = arith.divf %251, %252 : vector<2x128xf32>
    %254 = math.tanh %248 : vector<2x128xf32>
    %255 = vector.extract_strided_slice %253 {offsets = [0, 0], sizes = [2, 32], strides = [1, 1]} : vector<2x128xf32> to vector<2x32xf32>
    %256 = vector.extract_strided_slice %253 {offsets = [0, 32], sizes = [2, 32], strides = [1, 1]} : vector<2x128xf32> to vector<2x32xf32>
    %257 = vector.extract_strided_slice %254 {offsets = [0, 64], sizes = [2, 32], strides = [1, 1]} : vector<2x128xf32> to vector<2x32xf32>
    %258 = vector.extract_strided_slice %253 {offsets = [0, 96], sizes = [2, 32], strides = [1, 1]} : vector<2x128xf32> to vector<2x32xf32>
    %259 = arith.mulf %256, %242 : vector<2x32xf32>
    %260 = arith.mulf %255, %257 : vector<2x32xf32>
    %261 = arith.addf %259, %260 : vector<2x32xf32>
    %262 = math.tanh %261 : vector<2x32xf32>
    %263 = arith.mulf %258, %262 : vector<2x32xf32>
    %c8_63 = arith.constant 8 : index
    %c0_64 = arith.constant 0 : index
    %264 = vector.load %arg14[%c8_63, %c0_64] : memref<16x32xf32, #tpu.memory_space<vmem>>, vector<2x32xf32>
    tpu.vector_store %arg14[%c8_63, %c0_64], %263 {strides = array<i32>} : memref<16x32xf32, #tpu.memory_space<vmem>>, vector<2x32xf32>,
    %265 = vector.extract_strided_slice %167 {offsets = [10, 0], sizes = [2, 128], strides = [1, 1]} : vector<16x128xf32> to vector<2x128xf32>
    %cst_65 = arith.constant dense<0.000000e+00> : vector<2x128xf32>
    %266 = tpu.matmul %263, %164, %cst_65 {dimension_numbers = #tpu.dot_dimension_numbers<[1], [0], [0], [1], [0, 0, 1, 1], [], []>} : vector<2x32xf32>, vector<32x128xf32>, vector<2x128xf32> -> vector<2x128xf32>
    %267 = arith.addf %265, %266 : vector<2x128xf32>
    %268 = arith.negf %267 : vector<2x128xf32>
    %269 = math.exp %268 : vector<2x128xf32>
    %cst_66 = arith.constant 1.000000e+00 : f32
    %270 = vector.broadcast %cst_66 : f32 to vector<2x128xf32>
    %271 = arith.addf %270, %269 : vector<2x128xf32>
    %272 = arith.divf %270, %271 : vector<2x128xf32>
    %273 = math.tanh %267 : vector<2x128xf32>
    %274 = vector.extract_strided_slice %272 {offsets = [0, 0], sizes = [2, 32], strides = [1, 1]} : vector<2x128xf32> to vector<2x32xf32>
    %275 = vector.extract_strided_slice %272 {offsets = [0, 32], sizes = [2, 32], strides = [1, 1]} : vector<2x128xf32> to vector<2x32xf32>
    %276 = vector.extract_strided_slice %273 {offsets = [0, 64], sizes = [2, 32], strides = [1, 1]} : vector<2x128xf32> to vector<2x32xf32>
    %277 = vector.extract_strided_slice %272 {offsets = [0, 96], sizes = [2, 32], strides = [1, 1]} : vector<2x128xf32> to vector<2x32xf32>
    %278 = arith.mulf %275, %261 : vector<2x32xf32>
    %279 = arith.mulf %274, %276 : vector<2x32xf32>
    %280 = arith.addf %278, %279 : vector<2x32xf32>
    %281 = math.tanh %280 : vector<2x32xf32>
    %282 = arith.mulf %277, %281 : vector<2x32xf32>
    %c10_67 = arith.constant 10 : index
    %c0_68 = arith.constant 0 : index
    %283 = vector.load %arg14[%c10_67, %c0_68] : memref<16x32xf32, #tpu.memory_space<vmem>>, vector<2x32xf32>
    tpu.vector_store %arg14[%c10_67, %c0_68], %282 {strides = array<i32>} : memref<16x32xf32, #tpu.memory_space<vmem>>, vector<2x32xf32>,
    %284 = vector.extract_strided_slice %167 {offsets = [12, 0], sizes = [2, 128], strides = [1, 1]} : vector<16x128xf32> to vector<2x128xf32>
    %cst_69 = arith.constant dense<0.000000e+00> : vector<2x128xf32>
    %285 = tpu.matmul %282, %164, %cst_69 {dimension_numbers = #tpu.dot_dimension_numbers<[1], [0], [0], [1], [0, 0, 1, 1], [], []>} : vector<2x32xf32>, vector<32x128xf32>, vector<2x128xf32> -> vector<2x128xf32>
    %286 = arith.addf %284, %285 : vector<2x128xf32>
    %287 = arith.negf %286 : vector<2x128xf32>
    %288 = math.exp %287 : vector<2x128xf32>
    %cst_70 = arith.constant 1.000000e+00 : f32
    %289 = vector.broadcast %cst_70 : f32 to vector<2x128xf32>
    %290 = arith.addf %289, %288 : vector<2x128xf32>
    %291 = arith.divf %289, %290 : vector<2x128xf32>
    %292 = math.tanh %286 : vector<2x128xf32>
    %293 = vector.extract_strided_slice %291 {offsets = [0, 0], sizes = [2, 32], strides = [1, 1]} : vector<2x128xf32> to vector<2x32xf32>
    %294 = vector.extract_strided_slice %291 {offsets = [0, 32], sizes = [2, 32], strides = [1, 1]} : vector<2x128xf32> to vector<2x32xf32>
    %295 = vector.extract_strided_slice %292 {offsets = [0, 64], sizes = [2, 32], strides = [1, 1]} : vector<2x128xf32> to vector<2x32xf32>
    %296 = vector.extract_strided_slice %291 {offsets = [0, 96], sizes = [2, 32], strides = [1, 1]} : vector<2x128xf32> to vector<2x32xf32>
    %297 = arith.mulf %294, %280 : vector<2x32xf32>
    %298 = arith.mulf %293, %295 : vector<2x32xf32>
    %299 = arith.addf %297, %298 : vector<2x32xf32>
    %300 = math.tanh %299 : vector<2x32xf32>
    %301 = arith.mulf %296, %300 : vector<2x32xf32>
    %c12_71 = arith.constant 12 : index
    %c0_72 = arith.constant 0 : index
    %302 = vector.load %arg14[%c12_71, %c0_72] : memref<16x32xf32, #tpu.memory_space<vmem>>, vector<2x32xf32>
    tpu.vector_store %arg14[%c12_71, %c0_72], %301 {strides = array<i32>} : memref<16x32xf32, #tpu.memory_space<vmem>>, vector<2x32xf32>,
    %303 = vector.extract_strided_slice %167 {offsets = [14, 0], sizes = [2, 128], strides = [1, 1]} : vector<16x128xf32> to vector<2x128xf32>
    %cst_73 = arith.constant dense<0.000000e+00> : vector<2x128xf32>
    %304 = tpu.matmul %301, %164, %cst_73 {dimension_numbers = #tpu.dot_dimension_numbers<[1], [0], [0], [1], [0, 0, 1, 1], [], []>} : vector<2x32xf32>, vector<32x128xf32>, vector<2x128xf32> -> vector<2x128xf32>
    %305 = arith.addf %303, %304 : vector<2x128xf32>
    %306 = arith.negf %305 : vector<2x128xf32>
    %307 = math.exp %306 : vector<2x128xf32>
    %cst_74 = arith.constant 1.000000e+00 : f32
    %308 = vector.broadcast %cst_74 : f32 to vector<2x128xf32>
    %309 = arith.addf %308, %307 : vector<2x128xf32>
    %310 = arith.divf %308, %309 : vector<2x128xf32>
    %311 = math.tanh %305 : vector<2x128xf32>
    %312 = vector.extract_strided_slice %310 {offsets = [0, 0], sizes = [2, 32], strides = [1, 1]} : vector<2x128xf32> to vector<2x32xf32>
    %313 = vector.extract_strided_slice %310 {offsets = [0, 32], sizes = [2, 32], strides = [1, 1]} : vector<2x128xf32> to vector<2x32xf32>
    %314 = vector.extract_strided_slice %311 {offsets = [0, 64], sizes = [2, 32], strides = [1, 1]} : vector<2x128xf32> to vector<2x32xf32>
    %315 = vector.extract_strided_slice %310 {offsets = [0, 96], sizes = [2, 32], strides = [1, 1]} : vector<2x128xf32> to vector<2x32xf32>
    %316 = arith.mulf %313, %299 : vector<2x32xf32>
    %317 = arith.mulf %312, %314 : vector<2x32xf32>
    %318 = arith.addf %316, %317 : vector<2x32xf32>
    %319 = math.tanh %318 : vector<2x32xf32>
    %320 = arith.mulf %315, %319 : vector<2x32xf32>
    %c14_75 = arith.constant 14 : index
    %c0_76 = arith.constant 0 : index
    %321 = vector.load %arg14[%c14_75, %c0_76] : memref<16x32xf32, #tpu.memory_space<vmem>>, vector<2x32xf32>
    tpu.vector_store %arg14[%c14_75, %c0_76], %320 {strides = array<i32>} : memref<16x32xf32, #tpu.memory_space<vmem>>, vector<2x32xf32>,
    %c0_77 = arith.constant 0 : index
    %c0_78 = arith.constant 0 : index
    %322 = vector.load %arg14[%c0_77, %c0_78] : memref<16x32xf32, #tpu.memory_space<vmem>>, vector<16x32xf32>
    %c0_79 = arith.constant 0 : index
    %c0_80 = arith.constant 0 : index
    %323 = vector.load %arg7[%c0_79, %c0_80] : memref<32x128xf32, #tpu.memory_space<vmem>>, vector<32x128xf32>
    %c0_81 = arith.constant 0 : index
    %c0_82 = arith.constant 0 : index
    %324 = vector.load %arg9[%c0_81, %c0_82] : memref<1x128xf32, #tpu.memory_space<vmem>>, vector<1x128xf32>
    %c0_83 = arith.constant 0 : index
    %c0_84 = arith.constant 0 : index
    %325 = vector.load %arg8[%c0_83, %c0_84] : memref<32x128xf32, #tpu.memory_space<vmem>>, vector<32x128xf32>
    %cst_85 = arith.constant dense<0.000000e+00> : vector<16x128xf32>
    %326 = tpu.matmul %322, %323, %cst_85 {dimension_numbers = #tpu.dot_dimension_numbers<[1], [0], [0], [1], [0, 0, 1, 1], [], []>} : vector<16x32xf32>, vector<32x128xf32>, vector<16x128xf32> -> vector<16x128xf32>
    %327 = vector.broadcast %324 : vector<1x128xf32> to vector<16x128xf32>
    %328 = arith.addf %326, %327 : vector<16x128xf32>
    %cst_86 = arith.constant 0.000000e+00 : f32
    %329 = vector.broadcast %cst_86 : f32 to vector<2x32xf32>
    %cst_87 = arith.constant 0.000000e+00 : f32
    %330 = vector.broadcast %cst_87 : f32 to vector<2x32xf32>
    %331 = vector.extract_strided_slice %328 {offsets = [0, 0], sizes = [2, 128], strides = [1, 1]} : vector<16x128xf32> to vector<2x128xf32>
    %cst_88 = arith.constant dense<0.000000e+00> : vector<2x128xf32>
    %332 = tpu.matmul %329, %325, %cst_88 {dimension_numbers = #tpu.dot_dimension_numbers<[1], [0], [0], [1], [0, 0, 1, 1], [], []>} : vector<2x32xf32>, vector<32x128xf32>, vector<2x128xf32> -> vector<2x128xf32>
    %333 = arith.addf %331, %332 : vector<2x128xf32>
    %334 = arith.negf %333 : vector<2x128xf32>
    %335 = math.exp %334 : vector<2x128xf32>
    %cst_89 = arith.constant 1.000000e+00 : f32
    %336 = vector.broadcast %cst_89 : f32 to vector<2x128xf32>
    %337 = arith.addf %336, %335 : vector<2x128xf32>
    %338 = arith.divf %336, %337 : vector<2x128xf32>
    %339 = math.tanh %333 : vector<2x128xf32>
    %340 = vector.extract_strided_slice %338 {offsets = [0, 0], sizes = [2, 32], strides = [1, 1]} : vector<2x128xf32> to vector<2x32xf32>
    %341 = vector.extract_strided_slice %338 {offsets = [0, 32], sizes = [2, 32], strides = [1, 1]} : vector<2x128xf32> to vector<2x32xf32>
    %342 = vector.extract_strided_slice %339 {offsets = [0, 64], sizes = [2, 32], strides = [1, 1]} : vector<2x128xf32> to vector<2x32xf32>
    %343 = vector.extract_strided_slice %338 {offsets = [0, 96], sizes = [2, 32], strides = [1, 1]} : vector<2x128xf32> to vector<2x32xf32>
    %344 = arith.mulf %341, %330 : vector<2x32xf32>
    %345 = arith.mulf %340, %342 : vector<2x32xf32>
    %346 = arith.addf %344, %345 : vector<2x32xf32>
    %347 = math.tanh %346 : vector<2x32xf32>
    %348 = arith.mulf %343, %347 : vector<2x32xf32>
    %349 = vector.extract_strided_slice %328 {offsets = [2, 0], sizes = [2, 128], strides = [1, 1]} : vector<16x128xf32> to vector<2x128xf32>
    %cst_90 = arith.constant dense<0.000000e+00> : vector<2x128xf32>
    %350 = tpu.matmul %348, %325, %cst_90 {dimension_numbers = #tpu.dot_dimension_numbers<[1], [0], [0], [1], [0, 0, 1, 1], [], []>} : vector<2x32xf32>, vector<32x128xf32>, vector<2x128xf32> -> vector<2x128xf32>
    %351 = arith.addf %349, %350 : vector<2x128xf32>
    %352 = arith.negf %351 : vector<2x128xf32>
    %353 = math.exp %352 : vector<2x128xf32>
    %cst_91 = arith.constant 1.000000e+00 : f32
    %354 = vector.broadcast %cst_91 : f32 to vector<2x128xf32>
    %355 = arith.addf %354, %353 : vector<2x128xf32>
    %356 = arith.divf %354, %355 : vector<2x128xf32>
    %357 = math.tanh %351 : vector<2x128xf32>
    %358 = vector.extract_strided_slice %356 {offsets = [0, 0], sizes = [2, 32], strides = [1, 1]} : vector<2x128xf32> to vector<2x32xf32>
    %359 = vector.extract_strided_slice %356 {offsets = [0, 32], sizes = [2, 32], strides = [1, 1]} : vector<2x128xf32> to vector<2x32xf32>
    %360 = vector.extract_strided_slice %357 {offsets = [0, 64], sizes = [2, 32], strides = [1, 1]} : vector<2x128xf32> to vector<2x32xf32>
    %361 = vector.extract_strided_slice %356 {offsets = [0, 96], sizes = [2, 32], strides = [1, 1]} : vector<2x128xf32> to vector<2x32xf32>
    %362 = arith.mulf %359, %346 : vector<2x32xf32>
    %363 = arith.mulf %358, %360 : vector<2x32xf32>
    %364 = arith.addf %362, %363 : vector<2x32xf32>
    %365 = math.tanh %364 : vector<2x32xf32>
    %366 = arith.mulf %361, %365 : vector<2x32xf32>
    %367 = vector.extract_strided_slice %328 {offsets = [4, 0], sizes = [2, 128], strides = [1, 1]} : vector<16x128xf32> to vector<2x128xf32>
    %cst_92 = arith.constant dense<0.000000e+00> : vector<2x128xf32>
    %368 = tpu.matmul %366, %325, %cst_92 {dimension_numbers = #tpu.dot_dimension_numbers<[1], [0], [0], [1], [0, 0, 1, 1], [], []>} : vector<2x32xf32>, vector<32x128xf32>, vector<2x128xf32> -> vector<2x128xf32>
    %369 = arith.addf %367, %368 : vector<2x128xf32>
    %370 = arith.negf %369 : vector<2x128xf32>
    %371 = math.exp %370 : vector<2x128xf32>
    %cst_93 = arith.constant 1.000000e+00 : f32
    %372 = vector.broadcast %cst_93 : f32 to vector<2x128xf32>
    %373 = arith.addf %372, %371 : vector<2x128xf32>
    %374 = arith.divf %372, %373 : vector<2x128xf32>
    %375 = math.tanh %369 : vector<2x128xf32>
    %376 = vector.extract_strided_slice %374 {offsets = [0, 0], sizes = [2, 32], strides = [1, 1]} : vector<2x128xf32> to vector<2x32xf32>
    %377 = vector.extract_strided_slice %374 {offsets = [0, 32], sizes = [2, 32], strides = [1, 1]} : vector<2x128xf32> to vector<2x32xf32>
    %378 = vector.extract_strided_slice %375 {offsets = [0, 64], sizes = [2, 32], strides = [1, 1]} : vector<2x128xf32> to vector<2x32xf32>
    %379 = vector.extract_strided_slice %374 {offsets = [0, 96], sizes = [2, 32], strides = [1, 1]} : vector<2x128xf32> to vector<2x32xf32>
    %380 = arith.mulf %377, %364 : vector<2x32xf32>
    %381 = arith.mulf %376, %378 : vector<2x32xf32>
    %382 = arith.addf %380, %381 : vector<2x32xf32>
    %383 = math.tanh %382 : vector<2x32xf32>
    %384 = arith.mulf %379, %383 : vector<2x32xf32>
    %385 = vector.extract_strided_slice %328 {offsets = [6, 0], sizes = [2, 128], strides = [1, 1]} : vector<16x128xf32> to vector<2x128xf32>
    %cst_94 = arith.constant dense<0.000000e+00> : vector<2x128xf32>
    %386 = tpu.matmul %384, %325, %cst_94 {dimension_numbers = #tpu.dot_dimension_numbers<[1], [0], [0], [1], [0, 0, 1, 1], [], []>} : vector<2x32xf32>, vector<32x128xf32>, vector<2x128xf32> -> vector<2x128xf32>
    %387 = arith.addf %385, %386 : vector<2x128xf32>
    %388 = arith.negf %387 : vector<2x128xf32>
    %389 = math.exp %388 : vector<2x128xf32>
    %cst_95 = arith.constant 1.000000e+00 : f32
    %390 = vector.broadcast %cst_95 : f32 to vector<2x128xf32>
    %391 = arith.addf %390, %389 : vector<2x128xf32>
    %392 = arith.divf %390, %391 : vector<2x128xf32>
    %393 = math.tanh %387 : vector<2x128xf32>
    %394 = vector.extract_strided_slice %392 {offsets = [0, 0], sizes = [2, 32], strides = [1, 1]} : vector<2x128xf32> to vector<2x32xf32>
    %395 = vector.extract_strided_slice %392 {offsets = [0, 32], sizes = [2, 32], strides = [1, 1]} : vector<2x128xf32> to vector<2x32xf32>
    %396 = vector.extract_strided_slice %393 {offsets = [0, 64], sizes = [2, 32], strides = [1, 1]} : vector<2x128xf32> to vector<2x32xf32>
    %397 = vector.extract_strided_slice %392 {offsets = [0, 96], sizes = [2, 32], strides = [1, 1]} : vector<2x128xf32> to vector<2x32xf32>
    %398 = arith.mulf %395, %382 : vector<2x32xf32>
    %399 = arith.mulf %394, %396 : vector<2x32xf32>
    %400 = arith.addf %398, %399 : vector<2x32xf32>
    %401 = math.tanh %400 : vector<2x32xf32>
    %402 = arith.mulf %397, %401 : vector<2x32xf32>
    %403 = vector.extract_strided_slice %328 {offsets = [8, 0], sizes = [2, 128], strides = [1, 1]} : vector<16x128xf32> to vector<2x128xf32>
    %cst_96 = arith.constant dense<0.000000e+00> : vector<2x128xf32>
    %404 = tpu.matmul %402, %325, %cst_96 {dimension_numbers = #tpu.dot_dimension_numbers<[1], [0], [0], [1], [0, 0, 1, 1], [], []>} : vector<2x32xf32>, vector<32x128xf32>, vector<2x128xf32> -> vector<2x128xf32>
    %405 = arith.addf %403, %404 : vector<2x128xf32>
    %406 = arith.negf %405 : vector<2x128xf32>
    %407 = math.exp %406 : vector<2x128xf32>
    %cst_97 = arith.constant 1.000000e+00 : f32
    %408 = vector.broadcast %cst_97 : f32 to vector<2x128xf32>
    %409 = arith.addf %408, %407 : vector<2x128xf32>
    %410 = arith.divf %408, %409 : vector<2x128xf32>
    %411 = math.tanh %405 : vector<2x128xf32>
    %412 = vector.extract_strided_slice %410 {offsets = [0, 0], sizes = [2, 32], strides = [1, 1]} : vector<2x128xf32> to vector<2x32xf32>
    %413 = vector.extract_strided_slice %410 {offsets = [0, 32], sizes = [2, 32], strides = [1, 1]} : vector<2x128xf32> to vector<2x32xf32>
    %414 = vector.extract_strided_slice %411 {offsets = [0, 64], sizes = [2, 32], strides = [1, 1]} : vector<2x128xf32> to vector<2x32xf32>
    %415 = vector.extract_strided_slice %410 {offsets = [0, 96], sizes = [2, 32], strides = [1, 1]} : vector<2x128xf32> to vector<2x32xf32>
    %416 = arith.mulf %413, %400 : vector<2x32xf32>
    %417 = arith.mulf %412, %414 : vector<2x32xf32>
    %418 = arith.addf %416, %417 : vector<2x32xf32>
    %419 = math.tanh %418 : vector<2x32xf32>
    %420 = arith.mulf %415, %419 : vector<2x32xf32>
    %421 = vector.extract_strided_slice %328 {offsets = [10, 0], sizes = [2, 128], strides = [1, 1]} : vector<16x128xf32> to vector<2x128xf32>
    %cst_98 = arith.constant dense<0.000000e+00> : vector<2x128xf32>
    %422 = tpu.matmul %420, %325, %cst_98 {dimension_numbers = #tpu.dot_dimension_numbers<[1], [0], [0], [1], [0, 0, 1, 1], [], []>} : vector<2x32xf32>, vector<32x128xf32>, vector<2x128xf32> -> vector<2x128xf32>
    %423 = arith.addf %421, %422 : vector<2x128xf32>
    %424 = arith.negf %423 : vector<2x128xf32>
    %425 = math.exp %424 : vector<2x128xf32>
    %cst_99 = arith.constant 1.000000e+00 : f32
    %426 = vector.broadcast %cst_99 : f32 to vector<2x128xf32>
    %427 = arith.addf %426, %425 : vector<2x128xf32>
    %428 = arith.divf %426, %427 : vector<2x128xf32>
    %429 = math.tanh %423 : vector<2x128xf32>
    %430 = vector.extract_strided_slice %428 {offsets = [0, 0], sizes = [2, 32], strides = [1, 1]} : vector<2x128xf32> to vector<2x32xf32>
    %431 = vector.extract_strided_slice %428 {offsets = [0, 32], sizes = [2, 32], strides = [1, 1]} : vector<2x128xf32> to vector<2x32xf32>
    %432 = vector.extract_strided_slice %429 {offsets = [0, 64], sizes = [2, 32], strides = [1, 1]} : vector<2x128xf32> to vector<2x32xf32>
    %433 = vector.extract_strided_slice %428 {offsets = [0, 96], sizes = [2, 32], strides = [1, 1]} : vector<2x128xf32> to vector<2x32xf32>
    %434 = arith.mulf %431, %418 : vector<2x32xf32>
    %435 = arith.mulf %430, %432 : vector<2x32xf32>
    %436 = arith.addf %434, %435 : vector<2x32xf32>
    %437 = math.tanh %436 : vector<2x32xf32>
    %438 = arith.mulf %433, %437 : vector<2x32xf32>
    %439 = vector.extract_strided_slice %328 {offsets = [12, 0], sizes = [2, 128], strides = [1, 1]} : vector<16x128xf32> to vector<2x128xf32>
    %cst_100 = arith.constant dense<0.000000e+00> : vector<2x128xf32>
    %440 = tpu.matmul %438, %325, %cst_100 {dimension_numbers = #tpu.dot_dimension_numbers<[1], [0], [0], [1], [0, 0, 1, 1], [], []>} : vector<2x32xf32>, vector<32x128xf32>, vector<2x128xf32> -> vector<2x128xf32>
    %441 = arith.addf %439, %440 : vector<2x128xf32>
    %442 = arith.negf %441 : vector<2x128xf32>
    %443 = math.exp %442 : vector<2x128xf32>
    %cst_101 = arith.constant 1.000000e+00 : f32
    %444 = vector.broadcast %cst_101 : f32 to vector<2x128xf32>
    %445 = arith.addf %444, %443 : vector<2x128xf32>
    %446 = arith.divf %444, %445 : vector<2x128xf32>
    %447 = math.tanh %441 : vector<2x128xf32>
    %448 = vector.extract_strided_slice %446 {offsets = [0, 0], sizes = [2, 32], strides = [1, 1]} : vector<2x128xf32> to vector<2x32xf32>
    %449 = vector.extract_strided_slice %446 {offsets = [0, 32], sizes = [2, 32], strides = [1, 1]} : vector<2x128xf32> to vector<2x32xf32>
    %450 = vector.extract_strided_slice %447 {offsets = [0, 64], sizes = [2, 32], strides = [1, 1]} : vector<2x128xf32> to vector<2x32xf32>
    %451 = vector.extract_strided_slice %446 {offsets = [0, 96], sizes = [2, 32], strides = [1, 1]} : vector<2x128xf32> to vector<2x32xf32>
    %452 = arith.mulf %449, %436 : vector<2x32xf32>
    %453 = arith.mulf %448, %450 : vector<2x32xf32>
    %454 = arith.addf %452, %453 : vector<2x32xf32>
    %455 = math.tanh %454 : vector<2x32xf32>
    %456 = arith.mulf %451, %455 : vector<2x32xf32>
    %457 = vector.extract_strided_slice %328 {offsets = [14, 0], sizes = [2, 128], strides = [1, 1]} : vector<16x128xf32> to vector<2x128xf32>
    %cst_102 = arith.constant dense<0.000000e+00> : vector<2x128xf32>
    %458 = tpu.matmul %456, %325, %cst_102 {dimension_numbers = #tpu.dot_dimension_numbers<[1], [0], [0], [1], [0, 0, 1, 1], [], []>} : vector<2x32xf32>, vector<32x128xf32>, vector<2x128xf32> -> vector<2x128xf32>
    %459 = arith.addf %457, %458 : vector<2x128xf32>
    %460 = arith.negf %459 : vector<2x128xf32>
    %461 = math.exp %460 : vector<2x128xf32>
    %cst_103 = arith.constant 1.000000e+00 : f32
    %462 = vector.broadcast %cst_103 : f32 to vector<2x128xf32>
    %463 = arith.addf %462, %461 : vector<2x128xf32>
    %464 = arith.divf %462, %463 : vector<2x128xf32>
    %465 = math.tanh %459 : vector<2x128xf32>
    %466 = vector.extract_strided_slice %464 {offsets = [0, 0], sizes = [2, 32], strides = [1, 1]} : vector<2x128xf32> to vector<2x32xf32>
    %467 = vector.extract_strided_slice %464 {offsets = [0, 32], sizes = [2, 32], strides = [1, 1]} : vector<2x128xf32> to vector<2x32xf32>
    %468 = vector.extract_strided_slice %465 {offsets = [0, 64], sizes = [2, 32], strides = [1, 1]} : vector<2x128xf32> to vector<2x32xf32>
    %469 = vector.extract_strided_slice %464 {offsets = [0, 96], sizes = [2, 32], strides = [1, 1]} : vector<2x128xf32> to vector<2x32xf32>
    %470 = arith.mulf %467, %454 : vector<2x32xf32>
    %471 = arith.mulf %466, %468 : vector<2x32xf32>
    %472 = arith.addf %470, %471 : vector<2x32xf32>
    %473 = math.tanh %472 : vector<2x32xf32>
    %474 = arith.mulf %469, %473 : vector<2x32xf32>
    %c0_104 = arith.constant 0 : index
    %c0_105 = arith.constant 0 : index
    %475 = vector.load %arg10[%c0_104, %c0_105] : memref<1x32xf32, #tpu.memory_space<vmem>>, vector<1x32xf32>
    %476 = vector.broadcast %475 : vector<1x32xf32> to vector<2x32xf32>
    %477 = arith.mulf %474, %476 : vector<2x32xf32>
    %cst_106 = arith.constant dense<0.000000e+00> : vector<2xf32>
    %478 = vector.multi_reduction <add>, %477, %cst_106 [1] : vector<2x32xf32> to vector<2xf32>
    %479 = vector.shape_cast %478 : vector<2xf32> to vector<2x1xf32>
    %c0_107 = arith.constant 0 : index
    %c0_108 = arith.constant 0 : index
    %480 = vector.load %arg11[%c0_107, %c0_108] : memref<1x1xf32, #tpu.memory_space<vmem>>, vector<1x1xf32>
    %481 = vector.broadcast %480 : vector<1x1xf32> to vector<2x1xf32>
    %482 = arith.addf %479, %481 : vector<2x1xf32>
    %c0_109 = arith.constant 0 : index
    %c0_110 = arith.constant 0 : index
    %483 = vector.load %arg12[%c0_109, %c0_110] : memref<2x1xf32, #tpu.memory_space<vmem>>, vector<2x1xf32>
    tpu.vector_store %arg12[%c0_109, %c0_110], %482 {strides = array<i32>} : memref<2x1xf32, #tpu.memory_space<vmem>>, vector<2x1xf32>,
    return
  }
}

</mosaic_0001>

<bundles_post_ra>
// kernel: lstm_regressor.1
= control target key start
LH: loop header
LB: loop body
LE: loop exit
PB: predicated region body
PF: predicated region fallthrough
CT: control target
= control target key end

     0   :  { %s4547_s0 = inlined_call_operand.vmem [shape: f32[16,16], index: 0, kind: input, shape index: {}]   ;;  %s4548_s1 = inlined_call_operand.vmem [shape: f32[16,128], index: 1, kind: input, shape index: {}]   ;;  %s4549_s2 = inlined_call_operand.vmem [shape: f32[32,128], index: 2, kind: input, shape index: {}]   ;;  %s4550_s3 = inlined_call_operand.hbm [shape: f32[1,128], index: 3, kind: input, shape index: {}]   ;;  %s4551_s4 = inlined_call_operand.hbm [shape: f32[32,128], index: 4, kind: input, shape index: {}]   ;;  %s4552_s5 = inlined_call_operand.hbm [shape: f32[32,128], index: 5, kind: input, shape index: {}]   ;;  %s4553_s6 = inlined_call_operand.hbm [shape: f32[1,128], index: 6, kind: input, shape index: {}]   ;;  %s4554_s7 = inlined_call_operand.hbm [shape: f32[32,128], index: 7, kind: input, shape index: {}]   ;;  %s4555_s8 = inlined_call_operand.hbm [shape: f32[32,128], index: 8, kind: input, shape index: {}]   ;;  %s4556_s9 = inlined_call_operand.hbm [shape: f32[1,128], index: 9, kind: input, shape index: {}]   ;;  %s4557_s10 = inlined_call_operand.hbm [shape: f32[1,32], index: 10, kind: input, shape index: {}]   ;;  %s4558_s11 = inlined_call_operand.<no memory space> [shape: f32[1,1], index: 11, kind: input, shape index: {}]   ;;  %s4559_s12 = inlined_call_operand.vmem [shape: f32[2,1], index: 12, kind: output, shape index: {}]  }
   0x1   :  { %v17_v0 = vstv %s4558_s11 }
   0x2   :  { %18 = vst [vmem:[#allocation4] sm:$0x1] %v17_v0 }
   0x3   :  { %19 = vsyncpa [#allocation6], 0 }
   0x4   :  { %20 = vsyncpa [#allocation8], 0 }
   0x5   :  { %21 = vsyncpa [#allocation11], 0 }
   0x6   :  { %22 = vsyncpa [#allocation14], 0 }
   0x7   :  { %23 = vsyncpa [#allocation17], 0  ;;  %s3918_s23 = smov [#allocation7]  }
   0x8   :  { %s45_s24 = sshll.u32 %s3918_s23, 4  ;;  %s46_s24 = int_to_ptr.vmem [resolvable:$true] %s45_s24 }
   0x9   :  { %s3756_s25 = scalar_lea.vmem %s46_s24, 512  ;;  %p3761_p1 = scmp.lt.s32.totalorder %s46_s24, %s46_s24 }
   0xa   :  { %p3757_p0 = scmp.ne.s32.totalorder %s46_s24, %s3756_s25  ;;  %p3762_p2 = scmp.lt.s32.totalorder %s3756_s25, %s3756_s25 }
   0xc   :  { %p3763_p3 = por %p3762_p2, %p3761_p1 }
   0xe   :  { %p3764_p4 = pnand %p3763_p3, %p3757_p0 }
  0x10   :  { %3767 = shalt.err (!%p3764_p4)
}
  0x11   :  { %s3919_s26 = smov 128   ;;  %s3920_s27 = smov 8  }
  0x12   :  { %51 = dma.hbm_to_vmem [thread:$0]  %s4551_s4, 512, %s46_s24, [#allocation8], %s3919_s26, %s3919_s26, %s3920_s27  }
  0x13   :  { %s3921_s29 = smov [#allocation10]   ;;  %s3922_s13 = smov [#allocation13]  }
  0x14   :  { %s70_s30 = sshll.u32 %s3921_s29, 4  ;;  %s91_s14 = sshll.u32 %s3922_s13, 4  ;;  %s71_s30 = int_to_ptr.vmem [resolvable:$true] %s70_s30  ;;  %s92_s14 = int_to_ptr.vmem [resolvable:$true] %s91_s14 }
  0x15   :  { %s3776_s15 = scalar_lea.vmem %s71_s30, 16  ;;  %s3780_s16 = scalar_lea.vmem %s71_s30, 32 }
  0x16   :  { %p3777_p5 = scmp.ne.s32.totalorder %s71_s30, %s3776_s15  ;;  %p3781_p6 = scmp.lt.s32.totalorder %s71_s30, %s71_s30 }
  0x17   :  { %p3782_p7 = scmp.lt.s32.totalorder %s3780_s16, %s3776_s15 }
  0x19   :  { %p3783_p8 = por %p3782_p7, %p3781_p6 }
  0x1b   :  { %p3784_p9 = pnand %p3783_p8, %p3777_p5 }
  0x1d   :  { %3787 = shalt.err (!%p3784_p9)
}
  0x1e   :  { %73 = dma.hbm_to_vmem [thread:$0]  %s4553_s6, 16, %s71_s30, [#allocation11]  }
  0x1f   :  { %s3796_s19 = scalar_lea.vmem %s92_s14, 512  ;;  %p3801_p11 = scmp.lt.s32.totalorder %s92_s14, %s92_s14 }
  0x20   :  { %p3797_p10 = scmp.ne.s32.totalorder %s92_s14, %s3796_s19  ;;  %p3802_p12 = scmp.lt.s32.totalorder %s3796_s19, %s3796_s19 }
  0x22   :  { %p3803_p13 = por %p3802_p12, %p3801_p11 }
  0x24   :  { %p3804_p0 = pnand %p3803_p13, %p3797_p10 }
  0x26   :  { %3807 = shalt.err (!%p3804_p0)
}
  0x27   :  { %97 = dma.hbm_to_vmem [thread:$0]  %s4555_s8, 512, %s92_s14, [#allocation14], %s3919_s26, %s3919_s26, %s3920_s27  }
  0x28   :  { %s3923_s21 = smov [#allocation5]   ;;  %s3924_s23 = smov [#allocation9]  }
  0x29   :  { %s36_s22 = sshll.u32 %s3923_s21, 4  ;;  %s57_s6 = sshll.u32 %s3924_s23, 4  ;;  %s37_s22 = int_to_ptr.vmem [resolvable:$true] %s36_s22  ;;  %s58_s6 = int_to_ptr.vmem [resolvable:$true] %s57_s6 }
  0x2a   :  { %s3816_s24 = scalar_lea.vmem %s37_s22, 16  ;;  %s3820_s25 = scalar_lea.vmem %s37_s22, 32 }
  0x2b   :  { %p3817_p1 = scmp.ne.s32.totalorder %s37_s22, %s3816_s24  ;;  %p3821_p2 = scmp.lt.s32.totalorder %s37_s22, %s37_s22 }
  0x2c   :  { %p3822_p3 = scmp.lt.s32.totalorder %s3820_s25, %s3816_s24 }
  0x2e   :  { %p3823_p4 = por %p3822_p3, %p3821_p2 }
  0x30   :  { %p3824_p5 = pnand %p3823_p4, %p3817_p1 }
  0x32   :  { %3827 = shalt.err (!%p3824_p5)
}
  0x33   :  { %39 = dma.hbm_to_vmem [thread:$0]  %s4550_s3, 16, %s37_s22, [#allocation6]  }
  0x34   :  { %s3836_s29 = scalar_lea.vmem %s58_s6, 512  ;;  %p3841_p7 = scmp.lt.s32.totalorder %s58_s6, %s58_s6 }
  0x35   :  { %p3837_p6 = scmp.ne.s32.totalorder %s58_s6, %s3836_s29  ;;  %p3842_p8 = scmp.lt.s32.totalorder %s3836_s29, %s3836_s29 }
  0x37   :  { %p3843_p9 = por %p3842_p8, %p3841_p7 }
  0x39   :  { %p3844_p10 = pnand %p3843_p9, %p3837_p6 }
  0x3b   :  { %3847 = shalt.err (!%p3844_p10)
}
  0x3c   :  { %63 = dma.hbm_to_vmem [thread:$0]  %s4552_s5, 512, %s58_s6, [#allocation8], %s3919_s26, %s3919_s26, %s3920_s27  }
  0x3d   :  { %s3925_s13 = smov [#allocation12]   ;;  %s3926_s15 = smov [#allocation15]  }
  0x3e   :  { %s79_s14 = sshll.u32 %s3925_s13, 4  ;;  %s104_s3 = sshll.u32 %s3926_s15, 4  ;;  %s80_s14 = int_to_ptr.vmem [resolvable:$true] %s79_s14  ;;  %s105_s3 = int_to_ptr.vmem [resolvable:$true] %s104_s3 }
  0x3f   :  { %s3856_s16 = scalar_lea.vmem %s80_s14, 512  ;;  %p3861_p12 = scmp.lt.s32.totalorder %s80_s14, %s80_s14 }
  0x40   :  { %p3857_p11 = scmp.ne.s32.totalorder %s80_s14, %s3856_s16  ;;  %p3862_p13 = scmp.lt.s32.totalorder %s3856_s16, %s3856_s16 }
  0x42   :  { %p3863_p0 = por %p3862_p13, %p3861_p12 }
  0x44   :  { %p3864_p1 = pnand %p3863_p0, %p3857_p11 }
  0x46   :  { %3867 = shalt.err (!%p3864_p1)
}
  0x47   :  { %85 = dma.hbm_to_vmem [thread:$0]  %s4554_s7, 512, %s80_s14, [#allocation11], %s3919_s26, %s3919_s26, %s3920_s27  }
  0x48   :  { %s3876_s5 = scalar_lea.vmem %s105_s3, 16  ;;  %s3880_s19 = scalar_lea.vmem %s105_s3, 32 }
  0x49   :  { %p3877_p2 = scmp.ne.s32.totalorder %s105_s3, %s3876_s5  ;;  %p3881_p3 = scmp.lt.s32.totalorder %s105_s3, %s105_s3 }
  0x4a   :  { %p3882_p4 = scmp.lt.s32.totalorder %s3880_s19, %s3876_s5 }
  0x4c   :  { %p3883_p5 = por %p3882_p4, %p3881_p3 }
  0x4e   :  { %p3884_p6 = pnand %p3883_p5, %p3877_p2 }
  0x50   :  { %3887 = shalt.err (!%p3884_p6)
}
  0x51   :  { %107 = dma.hbm_to_vmem [thread:$0]  %s4556_s9, 16, %s105_s3, [#allocation14]  }
  0x52   :  { %s3927_s21 = smov [#allocation16]  }
  0x53   :  { %s114_s22 = sshll.u32 %s3927_s21, 4  ;;  %s115_s22 = int_to_ptr.vmem [resolvable:$true] %s114_s22 }
  0x54   :  { %s3896_s23 = scalar_lea.vmem %s115_s22, 16  ;;  %s3900_s6 = scalar_lea.vmem %s115_s22, 32 }
  0x55   :  { %p3897_p7 = scmp.ne.s32.totalorder %s115_s22, %s3896_s23  ;;  %p3901_p8 = scmp.lt.s32.totalorder %s115_s22, %s115_s22 }
  0x56   :  { %p3902_p9 = scmp.lt.s32.totalorder %s3900_s6, %s3896_s23 }
  0x58   :  { %p3903_p10 = por %p3902_p9, %p3901_p8 }
  0x5a   :  { %p3904_p11 = pnand %p3903_p10, %p3897_p7 }
  0x5c   :  { %3907 = shalt.err (!%p3904_p11)
}
  0x5d   :  { %117 = dma.hbm_to_vmem [thread:$0]  %s4557_s10, 16, %s115_s22, [#allocation17]  }
  0x5e   :  { %3908 = dma.done.wait [#allocation6], 16  }
  0x5f   :  { %3909 = vsyncadd [#allocation6], 4294967280 }
  0x60   :  { %3910 = dma.done.wait [#allocation8], 1024  }
  0x61   :  { %3911 = vsyncadd [#allocation8], 4294966272 }
  0x62   :  { %3912 = dma.done.wait [#allocation11], 528  }
  0x63   :  { %3913 = vsyncadd [#allocation11], 4294966768 }
  0x64   :  { %3914 = dma.done.wait [#allocation14], 528  }
  0x65   :  { %3915 = vsyncadd [#allocation14], 4294966768 }
  0x66   :  { %3916 = dma.done.wait [#allocation17], 16  }
  0x67   :  { %3917 = vsyncadd [#allocation17], 4294967280  ;;  %v3928_v1 = vmov 0.0   ;;  %vm3929_vm0 = vmmov 0   ;;  %v147_v2 = vld [vmem:[%s4548_s1 + $0x8] sm:$0xff]  ;;  %v4046_v3 = vld [vmem:[%s4549_s2 + $0x18] sm:$0xff] }
  0x68   :  { %3255 = vmatprep.subr.mxu1 %v3928_v1  ;;  %3263 = vmatprep.mubr.msk.f32.mxu1 %vm3929_vm0, %v3928_v1  ;;  %v146_v4 = vld [vmem:[%s4548_s1] sm:$0xff]  ;;  %v4055_v5 = vld [vmem:[%s4549_s2 + $0x10] sm:$0xff]  ;;  %vm159_vm1 = vcmask 130048   ;;  %v145_v7 = vld [vmem:[%s4547_s0 + $0x8] sm:$0xff]  ;;  %vm344_vm2 = vcmask 254976   ;;  %vm241_vm3 = vcmask 261120  }
  0x69   :  { %3248 = vmatprep.subr.mxu0 %v147_v2  ;;  %3256 = vmatpush3.msra.mxu1 %v4046_v3  ;;  %v144_v6 = vld [vmem:[%s4547_s0] sm:$0xff]  ;;  %v4068_v8 = vld [vmem:[%s4549_s2 + $0x8] sm:$0xff]  ;;  %s3930_s0 = smov 64   ;;  %vm453_vm4 = vcmask 257026   ;;  %vm677_vm5 = vcmask 261126   ;;  %vm565_vm6 = vcmask 259076  }
  0x6a   :  { %3249 = vmatpush3.msra.mxu0 %v147_v2  ;;  %3257 = vmatprep.subr.mxu1 %v3928_v1  ;;  %v4074_v9 = vld [vmem:[%s4549_s2] sm:$0xff]  ;;  %s3931_s2 = smov 32   ;;  %s3932_s17 = smov 96   ;;  %vm3045_vm7 = vcmask 7174  }
  0x6b   :  { %3250 = vmatprep.subr.mxu0 %v146_v4  ;;  %3258 = vmatpush3.msra.mxu1 %v4055_v5  ;;  %v3056_v10 = vld [vmem:[#allocation5] ss:$0 sm:$0xff] }
  0x6c   :  { %3251 = vmatpush3.msra.mxu0 %v146_v4  ;;  %3252 = vmatprep.mubr.msk.f32.mxu0 %vm159_vm1, %v144_v6 }
  0x6d   :  { %3259 = vmatprep.subr.mxu1 %v3928_v1  ;;  %3253 = vmatmul.mubr.msk.f32.vlgmr.msra.gmra.mxu0 %vm159_vm1, %v145_v7 }
  0x6e   :  { %3260 = vmatpush3.msra.mxu1 %v4068_v8  ;;  %3266 = vmatprep.subr.mxu0 %v3928_v1 }
  0x6f   :  { %3261 = vmatprep.subr.mxu1 %v3928_v1  ;;  %3267 = vmatpush3.msra.mxu0 %v4046_v3 }
  0x70   :  { %3262 = vmatpush3.msra.mxu1 %v4074_v9  ;;  %3268 = vmatprep.subr.mxu0 %v3928_v1 }
  0x71   :  { %3264 = vmatmul.mubr.f32.vlgmr.msra.gmra.mxu1 %v3928_v1  ;;  %3269 = vmatpush3.msra.mxu0 %v4055_v5 }
  0x72   :  { %3270 = vmatprep.subr.mxu0 %v3928_v1  ;;  %3274 = vmatprep.mubr.msk.f32.mxu0 %vm3929_vm0, %v3928_v1 }
  0x73   :  { %3271 = vmatpush3.msra.mxu0 %v4068_v8  ;;  %3277 = vmatprep.subr.mxu1 %v3928_v1 }
  0x74   :  { %3272 = vmatprep.subr.mxu0 %v3928_v1  ;;  %3278 = vmatpush3.msra.mxu1 %v4046_v3 }
  0x75   :  { %3273 = vmatpush3.msra.mxu0 %v4074_v9  ;;  %3279 = vmatprep.subr.mxu1 %v3928_v1 }
  0x76   :  { %3280 = vmatpush3.msra.mxu1 %v4055_v5  ;;  %3285 = vmatprep.mubr.msk.f32.mxu1 %vm3929_vm0, %v3928_v1 }
  0x77   :  { %3281 = vmatprep.subr.mxu1 %v3928_v1  ;;  %3288 = vmatprep.subr.mxu0 %v3928_v1 }
  0x78   :  { %3282 = vmatpush3.msra.mxu1 %v4068_v8 }
  0x79   :  { %3283 = vmatprep.subr.mxu1 %v3928_v1 }
  0x7a   :  { %3284 = vmatpush3.msra.mxu1 %v4074_v9 }
  0x7b   :  { %3299 = vmatprep.subr.mxu1 %v3928_v1 }
 0x12d   :  { %v3254_v11 = vpop.f32.mrf.mxu0 }
 0x12e   :  { %v4102_v12 = vadd.f32 %v3254_v11, %v3056_v10 }
 0x12f   :  { %v232_v13 = vpop.f32.mrf.mxu0 }
 0x130   :  { %v4104_v14 = vadd.f32 %v3056_v10, %v232_v13 }
 0x131   :  { %v311_v15 = vpop.f32.mrf.mxu1 }
 0x132   :  { %v315_v16 = vadd.f32 %v311_v15, %v4104_v14 }
 0x133   :  { %v3265_v17 = vpop.f32.mrf.mxu1 }
 0x134   :  { %3556 = vtanh.f32 %v315_v16  ;;  %v3059_v19 = vmul.f32 -1.442695, %v315_v16 }
 0x136   :  { %3558 = vpow2.f32 %v3059_v19 }
 0x141   :  { %v3557_v18 = vpop.eup %3556 }
 0x142   :  { %325 = vrot.lane.b32.xlu0 %v3557_v18, %s3930_s0 }
 0x143   :  { %v3559_v20 = vpop.eup %3558 }
 0x144   :  { %v319_v21 = vadd.f32 1.0, %v3559_v20 }
 0x146   :  { %3560 = vrcp.f32 %v319_v21 }
 0x153   :  { %v3561_v22 = vpop.eup %3560 }
 0x154   :  { %v323_v25 = vmul.f32 0.0, %v3561_v22 }
 0x1b4   :  { %v326_v23 = vpop.permute.xlu0 %325 }
 0x1b5   :  { %v328_v24 = vmul.f32 %v3561_v22, %v326_v23 }
 0x1b7   :  { %330 = vrot.lane.b32.xlu0 %v328_v24, %s3931_s2 }
 0x229   :  { %v331_v26 = vpop.permute.xlu0 %330 }
 0x22a   :  { %v333_v27 = vadd.f32 %v331_v26, %v323_v25 }
 0x22c   :  { %3562 = vtanh.f32 %v333_v27  ;;  %v430_v43 = vrot.slane %v333_v27, 6 }
 0x239   :  { %v3563_v28 = vpop.eup %3562 }
 0x23a   :  { %336 = vrot.lane.b32.xlu1 %v3563_v28, %s3930_s0 }
 0x2ac   :  { %v337_v29 = vpop.permute.xlu1 %336 }
 0x2ad   :  { %v339_v30 = vmul.f32 %v3561_v22, %v337_v29 }
 0x2af   :  { %341 = vrot.lane.b32.xlu1 %v339_v30, %s3931_s2 }
 0x321   :  { %v342_v31 = vpop.permute.xlu1 %341 }
 0x322   :  { %345 = vst.msk [vmem:[#allocation2] sm:$0x3] %vm344_vm2, %v342_v31  ;;  %3275 = vmatmul.mubr.msk.f32.vlgmr.msra.gmra.mxu0 %vm241_vm3, %v342_v31 }
 0x323   :  { %3289 = vmatpush3.msra.mxu0 %v4046_v3  ;;  %3296 = vmatprep.mubr.msk.f32.mxu0 %vm3929_vm0, %v3928_v1 }
 0x324   :  { %3290 = vmatprep.subr.mxu0 %v3928_v1 }
 0x325   :  { %3291 = vmatpush3.msra.mxu0 %v4055_v5 }
 0x326   :  { %3292 = vmatprep.subr.mxu0 %v3928_v1 }
 0x327   :  { %3293 = vmatpush3.msra.mxu0 %v4068_v8 }
 0x328   :  { %3294 = vmatprep.subr.mxu0 %v3928_v1 }
 0x329   :  { %3295 = vmatpush3.msra.mxu0 %v4074_v9 }
 0x32a   :  { %3310 = vmatprep.subr.mxu0 %v3928_v1 }
 0x3e2   :  { %v414_v32 = vpop.f32.mrf.mxu0 }
 0x3e3   :  { %v419_v33 = vrot.slane %v414_v32, 6 }
 0x3e4   :  { %v3276_v34 = vpop.f32.mrf.mxu0 }
 0x3e5   :  { %v421_v35 = vadd.f32 %v419_v33, %v4104_v14 }
 0x3e7   :  { %3564 = vtanh.f32 %v421_v35  ;;  %v3061_v37 = vmul.f32 -1.442695, %v421_v35 }
 0x3e9   :  { %3566 = vpow2.f32 %v3061_v37 }
 0x3f4   :  { %v3565_v36 = vpop.eup %3564 }
 0x3f5   :  { %434 = vrot.lane.b32.xlu0 %v3565_v36, %s3930_s0 }
 0x3f6   :  { %v3567_v38 = vpop.eup %3566 }
 0x3f7   :  { %v425_v39 = vadd.f32 1.0, %v3567_v38 }
 0x3f9   :  { %3568 = vrcp.f32 %v425_v39 }
 0x406   :  { %v3569_v40 = vpop.eup %3568 }
 0x407   :  { %v432_v44 = vmul.f32 %v3569_v40, %v430_v43 }
 0x467   :  { %v435_v41 = vpop.permute.xlu0 %434 }
 0x468   :  { %v437_v42 = vmul.f32 %v3569_v40, %v435_v41 }
 0x46a   :  { %439 = vrot.lane.b32.xlu1 %v437_v42, %s3931_s2 }
 0x4dc   :  { %v440_v45 = vpop.permute.xlu1 %439 }
 0x4dd   :  { %v442_v46 = vadd.f32 %v440_v45, %v432_v44 }
 0x4df   :  { %3570 = vtanh.f32 %v442_v46  ;;  %v542_v63 = vrot.slane %v442_v46, 6 }
 0x4ec   :  { %v3571_v47 = vpop.eup %3570 }
 0x4ed   :  { %445 = vrot.lane.b32.xlu0 %v3571_v47, %s3930_s0 }
 0x55f   :  { %v446_v48 = vpop.permute.xlu0 %445 }
 0x560   :  { %v4127_v49 = vmul.f32 %v3569_v40, %v446_v48 }
 0x562   :  { %v455_v50 = vrot.slane %v4127_v49, 2 }
 0x564   :  { %456 = vrot.lane.b32.xlu1 %v455_v50, %s3931_s2 }
 0x5d6   :  { %v457_v51 = vpop.permute.xlu1 %456 }
 0x5d7   :  { %3286 = vmatmul.mubr.msk.f32.vlgmr.msra.gmra.mxu1 %vm241_vm3, %v457_v51 }
 0x5d8   :  { %3300 = vmatpush3.msra.mxu1 %v4046_v3  ;;  %3307 = vmatprep.mubr.msk.f32.mxu1 %vm3929_vm0, %v3928_v1 }
 0x5d9   :  { %3301 = vmatprep.subr.mxu1 %v3928_v1 }
 0x5da   :  { %3302 = vmatpush3.msra.mxu1 %v4055_v5 }
 0x5db   :  { %3303 = vmatprep.subr.mxu1 %v3928_v1 }
 0x5dc   :  { %3304 = vmatpush3.msra.mxu1 %v4068_v8 }
 0x5dd   :  { %3305 = vmatprep.subr.mxu1 %v3928_v1 }
 0x5de   :  { %3306 = vmatpush3.msra.mxu1 %v4074_v9 }
 0x5df   :  { %3321 = vmatprep.subr.mxu1 %v3928_v1 }
 0x697   :  { %v526_v52 = vpop.f32.mrf.mxu1 }
 0x698   :  { %v531_v53 = vrot.slane %v526_v52, 4 }
 0x699   :  { %v3287_v54 = vpop.f32.mrf.mxu1 }
 0x69a   :  { %v533_v55 = vadd.f32 %v531_v53, %v4104_v14 }
 0x69c   :  { %3572 = vtanh.f32 %v533_v55  ;;  %v3063_v57 = vmul.f32 -1.442695, %v533_v55 }
 0x69e   :  { %3574 = vpow2.f32 %v3063_v57 }
 0x6a9   :  { %v3573_v56 = vpop.eup %3572 }
 0x6aa   :  { %546 = vrot.lane.b32.xlu0 %v3573_v56, %s3930_s0 }
 0x6ab   :  { %v3575_v58 = vpop.eup %3574 }
 0x6ac   :  { %v537_v59 = vadd.f32 1.0, %v3575_v58 }
 0x6ae   :  { %3576 = vrcp.f32 %v537_v59 }
 0x6bb   :  { %v3577_v60 = vpop.eup %3576 }
 0x6bc   :  { %v544_v0 = vmul.f32 %v3577_v60, %v542_v63 }
 0x71c   :  { %v547_v61 = vpop.permute.xlu0 %546 }
 0x71d   :  { %v549_v62 = vmul.f32 %v3577_v60, %v547_v61 }
 0x71f   :  { %551 = vrot.lane.b32.xlu1 %v549_v62, %s3931_s2 }
 0x791   :  { %v552_v2 = vpop.permute.xlu1 %551 }
 0x792   :  { %v554_v4 = vadd.f32 %v552_v2, %v544_v0 }
 0x794   :  { %3578 = vtanh.f32 %v554_v4  ;;  %v654_v26 = vrot.slane %v554_v4, 6 }
 0x7a1   :  { %v3579_v6 = vpop.eup %3578 }
 0x7a2   :  { %557 = vrot.lane.b32.xlu0 %v3579_v6, %s3930_s0 }
 0x814   :  { %v558_v7 = vpop.permute.xlu0 %557 }
 0x815   :  { %v4146_v10 = vmul.f32 %v3577_v60, %v558_v7 }
 0x817   :  { %v567_v11 = vrot.slane %v4146_v10, 4 }
 0x819   :  { %568 = vrot.lane.b32.xlu1 %v567_v11, %s3931_s2 }
 0x88b   :  { %v569_v13 = vpop.permute.xlu1 %568 }
 0x88c   :  { %3297 = vmatmul.mubr.msk.f32.vlgmr.msra.gmra.mxu0 %vm241_vm3, %v569_v13 }
 0x88d   :  { %3311 = vmatpush3.msra.mxu0 %v4046_v3  ;;  %3318 = vmatprep.mubr.msk.f32.mxu0 %vm3929_vm0, %v3928_v1 }
 0x88e   :  { %3312 = vmatprep.subr.mxu0 %v3928_v1 }
 0x88f   :  { %3313 = vmatpush3.msra.mxu0 %v4055_v5 }
 0x890   :  { %3314 = vmatprep.subr.mxu0 %v3928_v1 }
 0x891   :  { %3315 = vmatpush3.msra.mxu0 %v4068_v8 }
 0x892   :  { %3316 = vmatprep.subr.mxu0 %v3928_v1 }
 0x893   :  { %3317 = vmatpush3.msra.mxu0 %v4074_v9 }
 0x894   :  { %3332 = vmatprep.subr.mxu0 %v3928_v1 }
 0x94c   :  { %v638_v15 = vpop.f32.mrf.mxu0 }
 0x94d   :  { %v643_v16 = vrot.slane %v638_v15, 2 }
 0x94e   :  { %v3298_v17 = vpop.f32.mrf.mxu0 }
 0x94f   :  { %v645_v18 = vadd.f32 %v643_v16, %v4104_v14 }
 0x951   :  { %3580 = vtanh.f32 %v645_v18  ;;  %v3065_v20 = vmul.f32 -1.442695, %v645_v18 }
 0x953   :  { %3582 = vpow2.f32 %v3065_v20 }
 0x95e   :  { %v3581_v19 = vpop.eup %3580 }
 0x95f   :  { %658 = vrot.lane.b32.xlu0 %v3581_v19, %s3930_s0 }
 0x960   :  { %v3583_v21 = vpop.eup %3582 }
 0x961   :  { %v649_v22 = vadd.f32 1.0, %v3583_v21 }
 0x963   :  { %3584 = vrcp.f32 %v649_v22 }
 0x970   :  { %v3585_v23 = vpop.eup %3584 }
 0x971   :  { %v656_v27 = vmul.f32 %v3585_v23, %v654_v26 }
 0x9d1   :  { %v659_v24 = vpop.permute.xlu0 %658 }
 0x9d2   :  { %v661_v25 = vmul.f32 %v3585_v23, %v659_v24 }
 0x9d4   :  { %663 = vrot.lane.b32.xlu1 %v661_v25, %s3931_s2 }
 0xa46   :  { %v664_v28 = vpop.permute.xlu1 %663 }
 0xa47   :  { %v666_v29 = vadd.f32 %v664_v28, %v656_v27 }
 0xa49   :  { %3586 = vtanh.f32 %v666_v29  ;;  %v763_v44 = vrot.slane %v666_v29, 6 }
 0xa56   :  { %v3587_v14 = vpop.eup %3586 }
 0xa57   :  { %669 = vrot.lane.b32.xlu0 %v3587_v14, %s3930_s0 }
 0xac9   :  { %v670_v30 = vpop.permute.xlu0 %669 }
 0xaca   :  { %v4165_v31 = vmul.f32 %v3585_v23, %v670_v30 }
 0xacc   :  { %v679_v32 = vrot.slane %v4165_v31, 6 }
 0xace   :  { %680 = vrot.lane.b32.xlu1 %v679_v32, %s3931_s2 }
 0xb40   :  { %v681_v33 = vpop.permute.xlu1 %680 }
 0xb41   :  { %3308 = vmatmul.mubr.msk.f32.vlgmr.msra.gmra.mxu1 %vm241_vm3, %v681_v33 }
 0xb42   :  { %3322 = vmatpush3.msra.mxu1 %v4046_v3  ;;  %3329 = vmatprep.mubr.msk.f32.mxu1 %vm3929_vm0, %v3928_v1 }
 0xb43   :  { %3323 = vmatprep.subr.mxu1 %v3928_v1 }
 0xb44   :  { %3324 = vmatpush3.msra.mxu1 %v4055_v5 }
 0xb45   :  { %3325 = vmatprep.subr.mxu1 %v3928_v1 }
 0xb46   :  { %3326 = vmatpush3.msra.mxu1 %v4068_v8 }
 0xb47   :  { %3327 = vmatprep.subr.mxu1 %v3928_v1 }
 0xb48   :  { %3328 = vmatpush3.msra.mxu1 %v4074_v9 }
 0xc01   :  { %v750_v34 = vpop.f32.mrf.mxu1 }
 0xc02   :  { %v754_v35 = vadd.f32 %v750_v34, %v4102_v12 }
 0xc03   :  { %v3309_v36 = vpop.f32.mrf.mxu1 }
 0xc04   :  { %3588 = vtanh.f32 %v754_v35  ;;  %v3067_v38 = vmul.f32 -1.442695, %v754_v35 }
 0xc06   :  { %3590 = vpow2.f32 %v3067_v38 }
 0xc11   :  { %v3589_v37 = vpop.eup %3588 }
 0xc12   :  { %767 = vrot.lane.b32.xlu0 %v3589_v37, %s3930_s0 }
 0xc13   :  { %v3591_v39 = vpop.eup %3590 }
 0xc14   :  { %v758_v40 = vadd.f32 1.0, %v3591_v39 }
 0xc16   :  { %3592 = vrcp.f32 %v758_v40 }
 0xc23   :  { %v3593_v41 = vpop.eup %3592 }
 0xc24   :  { %v765_v45 = vmul.f32 %v3593_v41, %v763_v44 }
 0xc84   :  { %v768_v42 = vpop.permute.xlu0 %767 }
 0xc85   :  { %v770_v43 = vmul.f32 %v3593_v41, %v768_v42 }
 0xc87   :  { %772 = vrot.lane.b32.xlu1 %v770_v43, %s3931_s2 }
 0xcf9   :  { %v773_v46 = vpop.permute.xlu1 %772 }
 0xcfa   :  { %v775_v47 = vadd.f32 %v773_v46, %v765_v45 }
 0xcfc   :  { %3594 = vtanh.f32 %v775_v47 }
 0xd09   :  { %v3595_v48 = vpop.eup %3594 }
 0xd0a   :  { %778 = vrot.lane.b32.xlu0 %v3595_v48, %s3930_s0 }
 0xd7c   :  { %v779_v50 = vpop.permute.xlu0 %778 }
 0xd7d   :  { %v781_v51 = vmul.f32 %v3593_v41, %v779_v50  ;;  %v1122_v50 = vld [vmem:[#allocation7 + $0x18] sm:$0xff] }
 0xd7e   :  { %3343 = vmatprep.subr.mxu1 %v1122_v50 }
 0xd7f   :  { %783 = vrot.lane.b32.xlu1 %v781_v51, %s3931_s2  ;;  %v1121_v51 = vld [vmem:[#allocation7 + $0x10] sm:$0xff] }
 0xdf1   :  { %v784_v52 = vpop.permute.xlu1 %783 }
 0xdf2   :  { %786 = vst.msk [vmem:[#allocation2 + $0x8] sm:$0x3] %vm344_vm2, %v784_v52  ;;  %3319 = vmatmul.mubr.msk.f32.vlgmr.msra.gmra.mxu0 %vm241_vm3, %v784_v52  ;;  %v4229_v52 = vld [vmem:[#allocation9 + $0x18] sm:$0xff] }
 0xdf3   :  { %3333 = vmatpush3.msra.mxu0 %v4046_v3  ;;  %3340 = vmatprep.mubr.msk.f32.mxu0 %vm3929_vm0, %v3928_v1 }
 0xdf4   :  { %3334 = vmatprep.subr.mxu0 %v3928_v1 }
 0xdf5   :  { %3335 = vmatpush3.msra.mxu0 %v4055_v5 }
 0xdf6   :  { %3336 = vmatprep.subr.mxu0 %v3928_v1 }
 0xdf7   :  { %3337 = vmatpush3.msra.mxu0 %v4068_v8 }
 0xdf8   :  { %3338 = vmatprep.subr.mxu0 %v3928_v1 }
 0xdf9   :  { %3339 = vmatpush3.msra.mxu0 %v4074_v9  ;;  %v871_v9 = vrot.slane %v775_v47, 6 }
 0xdfa   :  { %3354 = vmatprep.subr.mxu0 %v3928_v1 }
 0xeb2   :  { %v855_v53 = vpop.f32.mrf.mxu0 }
 0xeb3   :  { %v860_v54 = vrot.slane %v855_v53, 6  ;;  %v4232_v53 = vld [vmem:[#allocation9 + $0x10] sm:$0xff] }
 0xeb4   :  { %v3320_v3 = vpop.f32.mrf.mxu0 }
 0xeb5   :  { %v862_v55 = vadd.f32 %v860_v54, %v4102_v12  ;;  %v1120_v54 = vld [vmem:[#allocation7 + $0x8] sm:$0xff] }
 0xeb6   :  { %v4235_v3 = vld [vmem:[#allocation9 + $0x8] sm:$0xff] }
 0xeb7   :  { %3596 = vtanh.f32 %v862_v55  ;;  %v3069_v5 = vmul.f32 -1.442695, %v862_v55  ;;  %v4241_v55 = vld [vmem:[#allocation9] sm:$0xff] }
 0xeb9   :  { %3598 = vpow2.f32 %v3069_v5 }
 0xec4   :  { %v3597_v56 = vpop.eup %3596 }
 0xec5   :  { %875 = vrot.lane.b32.xlu0 %v3597_v56, %s3930_s0 }
 0xec6   :  { %v3599_v57 = vpop.eup %3598 }
 0xec7   :  { %v866_v58 = vadd.f32 1.0, %v3599_v57 }
 0xec9   :  { %3600 = vrcp.f32 %v866_v58 }
 0xed6   :  { %v3601_v8 = vpop.eup %3600 }
 0xed7   :  { %v873_v61 = vmul.f32 %v3601_v8, %v871_v9 }
 0xf37   :  { %v876_v59 = vpop.permute.xlu0 %875 }
 0xf38   :  { %v878_v60 = vmul.f32 %v3601_v8, %v876_v59 }
 0xf3a   :  { %880 = vrot.lane.b32.xlu1 %v878_v60, %s3931_s2 }
 0xfac   :  { %v881_v62 = vpop.permute.xlu1 %880 }
 0xfad   :  { %v883_v63 = vadd.f32 %v881_v62, %v873_v61  ;;  %v3074_v62 = vld [vmem:[#allocation10] ss:$0 sm:$0xff] }
 0xfaf   :  { %3602 = vtanh.f32 %v883_v63  ;;  %v982_v24 = vrot.slane %v883_v63, 6 }
 0xfbc   :  { %v3603_v0 = vpop.eup %3602 }
 0xfbd   :  { %886 = vrot.lane.b32.xlu0 %v3603_v0, %s3930_s0 }
0x102f   :  { %v887_v2 = vpop.permute.xlu0 %886 }
0x1030   :  { %v4200_v4 = vmul.f32 %v3601_v8, %v887_v2 }
0x1032   :  { %v895_v6 = vrot.slane %v4200_v4, 2 }
0x1034   :  { %896 = vrot.lane.b32.xlu1 %v895_v6, %s3931_s2 }
0x10a6   :  { %v897_v7 = vpop.permute.xlu1 %896 }
0x10a7   :  { %3330 = vmatmul.mubr.msk.f32.vlgmr.msra.gmra.mxu1 %vm241_vm3, %v897_v7 }
0x10a8   :  { %3344 = vmatpush3.msra.mxu1 %v1122_v50 }
0x10a9   :  { %3345 = vmatprep.subr.mxu1 %v1121_v51 }
0x10aa   :  { %3346 = vmatpush3.msra.mxu1 %v1121_v51 }
0x10ab   :  { %3347 = vmatprep.subr.mxu1 %v1120_v54 }
0x10ac   :  { %3348 = vmatpush3.msra.mxu1 %v1120_v54 }
0x1167   :  { %v966_v11 = vpop.f32.mrf.mxu1 }
0x1168   :  { %v971_v13 = vrot.slane %v966_v11, 4 }
0x1169   :  { %v3331_v15 = vpop.f32.mrf.mxu1 }
0x116a   :  { %v973_v16 = vadd.f32 %v971_v13, %v4102_v12 }
0x116c   :  { %3604 = vtanh.f32 %v973_v16  ;;  %v3071_v18 = vmul.f32 -1.442695, %v973_v16 }
0x116e   :  { %3606 = vpow2.f32 %v3071_v18 }
0x1179   :  { %v3605_v17 = vpop.eup %3604 }
0x117a   :  { %986 = vrot.lane.b32.xlu0 %v3605_v17, %s3930_s0 }
0x117b   :  { %v3607_v19 = vpop.eup %3606 }
0x117c   :  { %v977_v20 = vadd.f32 1.0, %v3607_v19 }
0x117e   :  { %3608 = vrcp.f32 %v977_v20 }
0x118b   :  { %v3609_v21 = vpop.eup %3608 }
0x118c   :  { %v984_v25 = vmul.f32 %v3609_v21, %v982_v24 }
0x11ec   :  { %v987_v22 = vpop.permute.xlu0 %986 }
0x11ed   :  { %v989_v23 = vmul.f32 %v3609_v21, %v987_v22 }
0x11ef   :  { %991 = vrot.lane.b32.xlu1 %v989_v23, %s3931_s2 }
0x1261   :  { %v992_v26 = vpop.permute.xlu1 %991 }
0x1262   :  { %v994_v27 = vadd.f32 %v992_v26, %v984_v25 }
0x1264   :  { %3610 = vtanh.f32 %v994_v27 }
0x1271   :  { %v3611_v28 = vpop.eup %3610 }
0x1272   :  { %997 = vrot.lane.b32.xlu0 %v3611_v28, %s3930_s0 }
0x12e4   :  { %v998_v29 = vpop.permute.xlu0 %997 }
0x12e5   :  { %v1000_v14 = vmul.f32 %v3609_v21, %v998_v29 }
0x12e7   :  { %v1006_v30 = vrot.slane %v1000_v14, 4 }
0x12e9   :  { %1007 = vrot.lane.b32.xlu1 %v1006_v30, %s3931_s2 }
0x135b   :  { %v1008_v32 = vpop.permute.xlu1 %1007 }
0x135c   :  { %3341 = vmatmul.mubr.msk.f32.vlgmr.msra.gmra.mxu0 %vm241_vm3, %v1008_v32 }
0x135d   :  { %3362 = vmatprep.mubr.msk.f32.mxu0 %vm3929_vm0, %v3928_v1  ;;  %3355 = vmatpush3.msra.mxu0 %v4229_v52 }
0x135e   :  { %3356 = vmatprep.subr.mxu0 %v3928_v1 }
0x135f   :  { %3357 = vmatpush3.msra.mxu0 %v4232_v53 }
0x1360   :  { %3358 = vmatprep.subr.mxu0 %v3928_v1 }
0x1361   :  { %3359 = vmatpush3.msra.mxu0 %v4235_v3 }
0x1362   :  { %3360 = vmatprep.subr.mxu0 %v3928_v1 }
0x1363   :  { %3361 = vmatpush3.msra.mxu0 %v4241_v55 }
0x1364   :  { %3363 = vmatmul.mubr.f32.vlgmr.msra.gmra.mxu0 %v3928_v1  ;;  %3376 = vmatprep.subr.mxu0 %v3928_v1 }
0x1365   :  { %3377 = vmatpush3.msra.mxu0 %v4229_v52  ;;  %3384 = vmatprep.mubr.msk.f32.mxu0 %vm3929_vm0, %v3928_v1 }
0x1366   :  { %3378 = vmatprep.subr.mxu0 %v3928_v1 }
0x1367   :  { %3379 = vmatpush3.msra.mxu0 %v4232_v53 }
0x1368   :  { %3380 = vmatprep.subr.mxu0 %v3928_v1 }
0x1369   :  { %3381 = vmatpush3.msra.mxu0 %v4235_v3 }
0x136a   :  { %3382 = vmatprep.subr.mxu0 %v3928_v1 }
0x136b   :  { %3383 = vmatpush3.msra.mxu0 %v4241_v55 }
0x136c   :  { %3398 = vmatprep.subr.mxu0 %v3928_v1 }
0x141c   :  { %v1077_v33 = vpop.f32.mrf.mxu0 }
0x141d   :  { %v1082_v34 = vrot.slane %v1077_v33, 2 }
0x141e   :  { %v3342_v35 = vpop.f32.mrf.mxu0 }
0x141f   :  { %v1084_v36 = vadd.f32 %v1082_v34, %v4102_v12  ;;  %v1093_v12 = vrot.slane %v994_v27, 6 }
0x1421   :  { %3612 = vtanh.f32 %v1084_v36  ;;  %v3073_v38 = vmul.f32 -1.442695, %v1084_v36 }
0x1423   :  { %3614 = vpow2.f32 %v3073_v38 }
0x1424   :  { %v1281_v9 = vpop.f32.mrf.mxu0 }
0x1426   :  { %v3364_v61 = vpop.f32.mrf.mxu0 }
0x142e   :  { %v3613_v37 = vpop.eup %3612 }
0x142f   :  { %1097 = vrot.lane.b32.xlu0 %v3613_v37, %s3930_s0 }
0x1430   :  { %v3615_v39 = vpop.eup %3614 }
0x1431   :  { %v1088_v40 = vadd.f32 1.0, %v3615_v39 }
0x1433   :  { %3616 = vrcp.f32 %v1088_v40 }
0x1440   :  { %v3617_v41 = vpop.eup %3616 }
0x1441   :  { %v1095_v44 = vmul.f32 %v3617_v41, %v1093_v12 }
0x14a1   :  { %v1098_v42 = vpop.permute.xlu0 %1097 }
0x14a2   :  { %v1100_v43 = vmul.f32 %v3617_v41, %v1098_v42 }
0x14a4   :  { %1102 = vrot.lane.b32.xlu1 %v1100_v43, %s3931_s2 }
0x14a8   :  { %450 = vrot.lane.b32.xlu1 %v4127_v49, %s3931_s2 }
0x14ac   :  { %674 = vrot.lane.b32.xlu1 %v4165_v31, %s3931_s2 }
0x14b0   :  { %1002 = vrot.lane.b32.xlu1 %v1000_v14, %s3931_s2 }
0x1516   :  { %v1103_v45 = vpop.permute.xlu1 %1102 }
0x1517   :  { %v1105_v46 = vadd.f32 %v1103_v45, %v1095_v44 }
0x1519   :  { %3618 = vtanh.f32 %v1105_v46 }
0x151a   :  { %v451_v47 = vpop.permute.xlu1 %450 }
0x151b   :  { %454 = vst.msk [vmem:[#allocation2] sm:$0xc] %vm453_vm4, %v451_v47 }
0x151e   :  { %v675_v48 = vpop.permute.xlu1 %674 }
0x151f   :  { %678 = vst.msk [vmem:[#allocation2] sm:$0xc0] %vm677_vm5, %v675_v48 }
0x1522   :  { %v1003_v49 = vpop.permute.xlu1 %1002 }
0x1523   :  { %1005 = vst.msk [vmem:[#allocation2 + $0x8] sm:$0x30] %vm565_vm6, %v1003_v49 }
0x1526   :  { %v3619_v31 = vpop.eup %3618 }
0x1527   :  { %1108 = vrot.lane.b32.xlu0 %v3619_v31, %s3930_s0 }
0x152b   :  { %562 = vrot.lane.b32.xlu0 %v4146_v10, %s3931_s2  ;;  %v1119_v10 = vld [vmem:[#allocation7] sm:$0xff] }
0x152c   :  { %3349 = vmatprep.subr.mxu1 %v1119_v10 }
0x152d   :  { %3350 = vmatpush3.msra.mxu1 %v1119_v10 }
0x152e   :  { %3365 = vmatprep.subr.mxu1 %v3928_v1 }
0x152f   :  { %891 = vrot.lane.b32.xlu0 %v4200_v4, %s3931_s2 }
0x1599   :  { %v1109_v56 = vpop.permute.xlu0 %1108 }
0x159a   :  { %v1111_v5 = vmul.f32 %v3617_v41, %v1109_v56 }
0x159c   :  { %1113 = vrot.lane.b32.xlu0 %v1111_v5, %s3931_s2 }
0x159d   :  { %v563_v57 = vpop.permute.xlu0 %562 }
0x159e   :  { %566 = vst.msk [vmem:[#allocation2] sm:$0x30] %vm565_vm6, %v563_v57 }
0x15a1   :  { %v892_v58 = vpop.permute.xlu0 %891 }
0x15a2   :  { %894 = vst.msk [vmem:[#allocation2 + $0x8] sm:$0xc] %vm453_vm4, %v892_v58 }
0x15a5   :  { %v1117_v8 = vld [vmem:[#allocation2] sm:$0xff] }
0x15a6   :  { %3351 = vmatprep.mubr.msk.f32.mxu1 %vm241_vm3, %v1117_v8 }
0x160e   :  { %v1114_v59 = vpop.permute.xlu0 %1113 }
0x160f   :  { %1116 = vst.msk [vmem:[#allocation2 + $0x8] sm:$0xc0] %vm677_vm5, %v1114_v59 }
0x1616   :  { %v1118_v60 = vld [vmem:[#allocation2 + $0x8] sm:$0xff] }
0x1617   :  { %3352 = vmatmul.mubr.msk.f32.vlgmr.msra.gmra.mxu1 %vm241_vm3, %v1118_v60 }
0x1618   :  { %3366 = vmatpush3.msra.mxu1 %v4229_v52  ;;  %3373 = vmatprep.mubr.msk.f32.mxu1 %vm3929_vm0, %v3928_v1 }
0x1619   :  { %3367 = vmatprep.subr.mxu1 %v3928_v1 }
0x161a   :  { %3368 = vmatpush3.msra.mxu1 %v4232_v53 }
0x161b   :  { %3369 = vmatprep.subr.mxu1 %v3928_v1 }
0x161c   :  { %3370 = vmatpush3.msra.mxu1 %v4235_v3 }
0x161d   :  { %3371 = vmatprep.subr.mxu1 %v3928_v1 }
0x161e   :  { %3372 = vmatpush3.msra.mxu1 %v4241_v55 }
0x161f   :  { %3387 = vmatprep.subr.mxu1 %v3928_v1 }
0x16d7   :  { %v3353_v63 = vpop.f32.mrf.mxu1 }
0x16d8   :  { %v4273_v0 = vadd.f32 %v3353_v63, %v3074_v62 }
0x16d9   :  { %v1206_v2 = vpop.f32.mrf.mxu1 }
0x16da   :  { %v4275_v4 = vadd.f32 %v3074_v62, %v1206_v2 }
0x16dc   :  { %v1285_v6 = vadd.f32 %v1281_v9, %v4275_v4 }
0x16de   :  { %3620 = vtanh.f32 %v1285_v6  ;;  %v3077_v11 = vmul.f32 -1.442695, %v1285_v6 }
0x16e0   :  { %3622 = vpow2.f32 %v3077_v11 }
0x16eb   :  { %v3621_v7 = vpop.eup %3620 }
0x16ec   :  { %1295 = vrot.lane.b32.xlu1 %v3621_v7, %s3930_s0 }
0x16ed   :  { %v3623_v13 = vpop.eup %3622 }
0x16ee   :  { %v1289_v15 = vadd.f32 1.0, %v3623_v13 }
0x16f0   :  { %3624 = vrcp.f32 %v1289_v15 }
0x16fd   :  { %v3625_v16 = vpop.eup %3624 }
0x16fe   :  { %v1293_v19 = vmul.f32 0.0, %v3625_v16 }
0x175e   :  { %v1296_v17 = vpop.permute.xlu1 %1295 }
0x175f   :  { %v1298_v18 = vmul.f32 %v3625_v16, %v1296_v17 }
0x1761   :  { %1300 = vrot.lane.b32.xlu0 %v1298_v18, %s3931_s2 }
0x17d3   :  { %v1301_v20 = vpop.permute.xlu0 %1300 }
0x17d4   :  { %v1303_v21 = vadd.f32 %v1301_v20, %v1293_v19 }
0x17d6   :  { %3626 = vtanh.f32 %v1303_v21  ;;  %v1399_v37 = vrot.slane %v1303_v21, 6 }
0x17e3   :  { %v3627_v22 = vpop.eup %3626 }
0x17e4   :  { %1306 = vrot.lane.b32.xlu1 %v3627_v22, %s3930_s0 }
0x1856   :  { %v1307_v23 = vpop.permute.xlu1 %1306 }
0x1857   :  { %v1309_v24 = vmul.f32 %v3625_v16, %v1307_v23 }
0x1859   :  { %1311 = vrot.lane.b32.xlu0 %v1309_v24, %s3931_s2 }
0x18cb   :  { %v1312_v25 = vpop.permute.xlu0 %1311 }
0x18cc   :  { %1314 = vst.msk [vmem:[#allocation3] sm:$0x3] %vm344_vm2, %v1312_v25  ;;  %3374 = vmatmul.mubr.msk.f32.vlgmr.msra.gmra.mxu1 %vm241_vm3, %v1312_v25 }
0x18cd   :  { %3388 = vmatpush3.msra.mxu1 %v4229_v52  ;;  %3395 = vmatprep.mubr.msk.f32.mxu1 %vm3929_vm0, %v3928_v1 }
0x18ce   :  { %3389 = vmatprep.subr.mxu1 %v3928_v1 }
0x18cf   :  { %3390 = vmatpush3.msra.mxu1 %v4232_v53 }
0x18d0   :  { %3391 = vmatprep.subr.mxu1 %v3928_v1 }
0x18d1   :  { %3392 = vmatpush3.msra.mxu1 %v4235_v3 }
0x18d2   :  { %3393 = vmatprep.subr.mxu1 %v3928_v1 }
0x18d3   :  { %3394 = vmatpush3.msra.mxu1 %v4241_v55 }
0x18d4   :  { %3409 = vmatprep.subr.mxu1 %v3928_v1 }
0x198c   :  { %v1383_v26 = vpop.f32.mrf.mxu1 }
0x198d   :  { %v1388_v27 = vrot.slane %v1383_v26, 6 }
0x198e   :  { %v3375_v28 = vpop.f32.mrf.mxu1 }
0x198f   :  { %v1390_v29 = vadd.f32 %v1388_v27, %v4275_v4 }
0x1991   :  { %3628 = vtanh.f32 %v1390_v29  ;;  %v3079_v30 = vmul.f32 -1.442695, %v1390_v29 }
0x1993   :  { %3630 = vpow2.f32 %v3079_v30 }
0x199e   :  { %v3629_v14 = vpop.eup %3628 }
0x199f   :  { %1403 = vrot.lane.b32.xlu1 %v3629_v14, %s3930_s0 }
0x19a0   :  { %v3631_v32 = vpop.eup %3630 }
0x19a1   :  { %v1394_v33 = vadd.f32 1.0, %v3631_v32 }
0x19a3   :  { %3632 = vrcp.f32 %v1394_v33 }
0x19b0   :  { %v3633_v34 = vpop.eup %3632 }
0x19b1   :  { %v1401_v38 = vmul.f32 %v3633_v34, %v1399_v37 }
0x1a11   :  { %v1404_v35 = vpop.permute.xlu1 %1403 }
0x1a12   :  { %v1406_v36 = vmul.f32 %v3633_v34, %v1404_v35 }
0x1a14   :  { %1408 = vrot.lane.b32.xlu0 %v1406_v36, %s3931_s2 }
0x1a86   :  { %v1409_v39 = vpop.permute.xlu0 %1408 }
0x1a87   :  { %v1411_v40 = vadd.f32 %v1409_v39, %v1401_v38 }
0x1a89   :  { %3634 = vtanh.f32 %v1411_v40  ;;  %v1510_v5 = vrot.slane %v1411_v40, 6 }
0x1a96   :  { %v3635_v41 = vpop.eup %3634 }
0x1a97   :  { %1414 = vrot.lane.b32.xlu1 %v3635_v41, %s3930_s0 }
0x1b09   :  { %v1415_v42 = vpop.permute.xlu1 %1414 }
0x1b0a   :  { %v4298_v43 = vmul.f32 %v3633_v34, %v1415_v42 }
0x1b0c   :  { %v1423_v12 = vrot.slane %v4298_v43, 2 }
0x1b0e   :  { %1424 = vrot.lane.b32.xlu0 %v1423_v12, %s3931_s2 }
0x1b80   :  { %v1425_v44 = vpop.permute.xlu0 %1424 }
0x1b81   :  { %3385 = vmatmul.mubr.msk.f32.vlgmr.msra.gmra.mxu0 %vm241_vm3, %v1425_v44 }
0x1b82   :  { %3399 = vmatpush3.msra.mxu0 %v4229_v52  ;;  %3406 = vmatprep.mubr.msk.f32.mxu0 %vm3929_vm0, %v3928_v1 }
0x1b83   :  { %3400 = vmatprep.subr.mxu0 %v3928_v1 }
0x1b84   :  { %3401 = vmatpush3.msra.mxu0 %v4232_v53 }
0x1b85   :  { %3402 = vmatprep.subr.mxu0 %v3928_v1 }
0x1b86   :  { %3403 = vmatpush3.msra.mxu0 %v4235_v3 }
0x1b87   :  { %3404 = vmatprep.subr.mxu0 %v3928_v1 }
0x1b88   :  { %3405 = vmatpush3.msra.mxu0 %v4241_v55 }
0x1b89   :  { %3420 = vmatprep.subr.mxu0 %v3928_v1 }
0x1c41   :  { %v1494_v45 = vpop.f32.mrf.mxu0 }
0x1c42   :  { %v1499_v46 = vrot.slane %v1494_v45, 4 }
0x1c43   :  { %v3386_v47 = vpop.f32.mrf.mxu0 }
0x1c44   :  { %v1501_v48 = vadd.f32 %v1499_v46, %v4275_v4 }
0x1c46   :  { %3636 = vtanh.f32 %v1501_v48  ;;  %v3081_v31 = vmul.f32 -1.442695, %v1501_v48 }
0x1c48   :  { %3638 = vpow2.f32 %v3081_v31 }
0x1c53   :  { %v3637_v49 = vpop.eup %3636 }
0x1c54   :  { %1514 = vrot.lane.b32.xlu1 %v3637_v49, %s3930_s0 }
0x1c55   :  { %v3639_v50 = vpop.eup %3638 }
0x1c56   :  { %v1505_v51 = vadd.f32 1.0, %v3639_v50 }
0x1c58   :  { %3640 = vrcp.f32 %v1505_v51 }
0x1c65   :  { %v3641_v54 = vpop.eup %3640 }
0x1c66   :  { %v1512_v57 = vmul.f32 %v3641_v54, %v1510_v5 }
0x1cc6   :  { %v1515_v10 = vpop.permute.xlu1 %1514 }
0x1cc7   :  { %v1517_v56 = vmul.f32 %v3641_v54, %v1515_v10 }
0x1cc9   :  { %1519 = vrot.lane.b32.xlu0 %v1517_v56, %s3931_s2 }
0x1d3b   :  { %v1520_v58 = vpop.permute.xlu0 %1519 }
0x1d3c   :  { %v1522_v8 = vadd.f32 %v1520_v58, %v1512_v57 }
0x1d3e   :  { %3642 = vtanh.f32 %v1522_v8  ;;  %v1621_v20 = vrot.slane %v1522_v8, 6 }
0x1d4b   :  { %v3643_v59 = vpop.eup %3642 }
0x1d4c   :  { %1525 = vrot.lane.b32.xlu1 %v3643_v59, %s3930_s0 }
0x1dbe   :  { %v1526_v60 = vpop.permute.xlu1 %1525 }
0x1dbf   :  { %v4317_v9 = vmul.f32 %v3641_v54, %v1526_v60 }
0x1dc1   :  { %v1534_v61 = vrot.slane %v4317_v9, 4 }
0x1dc3   :  { %1535 = vrot.lane.b32.xlu0 %v1534_v61, %s3931_s2 }
0x1e35   :  { %v1536_v62 = vpop.permute.xlu0 %1535 }
0x1e36   :  { %3396 = vmatmul.mubr.msk.f32.vlgmr.msra.gmra.mxu1 %vm241_vm3, %v1536_v62 }
0x1e37   :  { %3410 = vmatpush3.msra.mxu1 %v4229_v52  ;;  %3417 = vmatprep.mubr.msk.f32.mxu1 %vm3929_vm0, %v3928_v1 }
0x1e38   :  { %3411 = vmatprep.subr.mxu1 %v3928_v1 }
0x1e39   :  { %3412 = vmatpush3.msra.mxu1 %v4232_v53 }
0x1e3a   :  { %3413 = vmatprep.subr.mxu1 %v3928_v1 }
0x1e3b   :  { %3414 = vmatpush3.msra.mxu1 %v4235_v3 }
0x1e3c   :  { %3415 = vmatprep.subr.mxu1 %v3928_v1 }
0x1e3d   :  { %3416 = vmatpush3.msra.mxu1 %v4241_v55 }
0x1e3e   :  { %3431 = vmatprep.subr.mxu1 %v3928_v1 }
0x1ef6   :  { %v1605_v63 = vpop.f32.mrf.mxu1 }
0x1ef7   :  { %v1610_v2 = vrot.slane %v1605_v63, 2 }
0x1ef8   :  { %v3397_v6 = vpop.f32.mrf.mxu1 }
0x1ef9   :  { %v1612_v7 = vadd.f32 %v1610_v2, %v4275_v4 }
0x1efb   :  { %3644 = vtanh.f32 %v1612_v7  ;;  %v3083_v13 = vmul.f32 -1.442695, %v1612_v7 }
0x1efd   :  { %3646 = vpow2.f32 %v3083_v13 }
0x1f08   :  { %v3645_v11 = vpop.eup %3644 }
0x1f09   :  { %1625 = vrot.lane.b32.xlu1 %v3645_v11, %s3930_s0 }
0x1f0a   :  { %v3647_v15 = vpop.eup %3646 }
0x1f0b   :  { %v1616_v16 = vadd.f32 1.0, %v3647_v15 }
0x1f0d   :  { %3648 = vrcp.f32 %v1616_v16 }
0x1f1a   :  { %v3649_v17 = vpop.eup %3648 }
0x1f1b   :  { %v1623_v21 = vmul.f32 %v3649_v17, %v1621_v20 }
0x1f7b   :  { %v1626_v18 = vpop.permute.xlu1 %1625 }
0x1f7c   :  { %v1628_v19 = vmul.f32 %v3649_v17, %v1626_v18 }
0x1f7e   :  { %1630 = vrot.lane.b32.xlu0 %v1628_v19, %s3931_s2 }
0x1ff0   :  { %v1631_v22 = vpop.permute.xlu0 %1630 }
0x1ff1   :  { %v1633_v23 = vadd.f32 %v1631_v22, %v1623_v21 }
0x1ff3   :  { %3650 = vtanh.f32 %v1633_v23  ;;  %v1729_v38 = vrot.slane %v1633_v23, 6 }
0x2000   :  { %v3651_v4 = vpop.eup %3650 }
0x2001   :  { %1636 = vrot.lane.b32.xlu1 %v3651_v4, %s3930_s0 }
0x2073   :  { %v1637_v24 = vpop.permute.xlu1 %1636 }
0x2074   :  { %v4336_v25 = vmul.f32 %v3649_v17, %v1637_v24 }
0x2076   :  { %v1645_v26 = vrot.slane %v4336_v25, 6 }
0x2078   :  { %1646 = vrot.lane.b32.xlu0 %v1645_v26, %s3931_s2 }
0x20ea   :  { %v1647_v27 = vpop.permute.xlu0 %1646 }
0x20eb   :  { %3407 = vmatmul.mubr.msk.f32.vlgmr.msra.gmra.mxu0 %vm241_vm3, %v1647_v27 }
0x20ec   :  { %3421 = vmatpush3.msra.mxu0 %v4229_v52  ;;  %3428 = vmatprep.mubr.msk.f32.mxu0 %vm3929_vm0, %v3928_v1 }
0x20ed   :  { %3422 = vmatprep.subr.mxu0 %v3928_v1 }
0x20ee   :  { %3423 = vmatpush3.msra.mxu0 %v4232_v53 }
0x20ef   :  { %3424 = vmatprep.subr.mxu0 %v3928_v1 }
0x20f0   :  { %3425 = vmatpush3.msra.mxu0 %v4235_v3 }
0x20f1   :  { %3426 = vmatprep.subr.mxu0 %v3928_v1 }
0x20f2   :  { %3427 = vmatpush3.msra.mxu0 %v4241_v55 }
0x21ab   :  { %v1716_v28 = vpop.f32.mrf.mxu0 }
0x21ac   :  { %v1720_v29 = vadd.f32 %v1716_v28, %v4273_v0 }
0x21ad   :  { %v3408_v14 = vpop.f32.mrf.mxu0 }
0x21ae   :  { %3652 = vtanh.f32 %v1720_v29  ;;  %v3085_v32 = vmul.f32 -1.442695, %v1720_v29 }
0x21b0   :  { %3654 = vpow2.f32 %v3085_v32 }
0x21bb   :  { %v3653_v30 = vpop.eup %3652 }
0x21bc   :  { %1733 = vrot.lane.b32.xlu1 %v3653_v30, %s3930_s0 }
0x21bd   :  { %v3655_v33 = vpop.eup %3654 }
0x21be   :  { %v1724_v34 = vadd.f32 1.0, %v3655_v33 }
0x21c0   :  { %3656 = vrcp.f32 %v1724_v34 }
0x21cd   :  { %v3657_v35 = vpop.eup %3656 }
0x21ce   :  { %v1731_v39 = vmul.f32 %v3657_v35, %v1729_v38 }
0x222e   :  { %v1734_v36 = vpop.permute.xlu1 %1733 }
0x222f   :  { %v1736_v37 = vmul.f32 %v3657_v35, %v1734_v36 }
0x2231   :  { %1738 = vrot.lane.b32.xlu0 %v1736_v37, %s3931_s2 }
0x22a3   :  { %v1739_v40 = vpop.permute.xlu0 %1738 }
0x22a4   :  { %v1741_v41 = vadd.f32 %v1739_v40, %v1731_v39 }
0x22a6   :  { %3658 = vtanh.f32 %v1741_v41 }
0x22b3   :  { %v3659_v42 = vpop.eup %3658 }
0x22b4   :  { %1744 = vrot.lane.b32.xlu1 %v3659_v42, %s3930_s0 }
0x2326   :  { %v1745_v12 = vpop.permute.xlu1 %1744 }
0x2327   :  { %v1747_v44 = vmul.f32 %v3657_v35, %v1745_v12 }
0x2329   :  { %1749 = vrot.lane.b32.xlu0 %v1747_v44, %s3931_s2  ;;  %v2087_v44 = vld [vmem:[#allocation12 + $0x10] sm:$0xff] }
0x239b   :  { %v1750_v45 = vpop.permute.xlu0 %1749 }
0x239c   :  { %1752 = vst.msk [vmem:[#allocation3 + $0x8] sm:$0x3] %vm344_vm2, %v1750_v45  ;;  %3418 = vmatmul.mubr.msk.f32.vlgmr.msra.gmra.mxu1 %vm241_vm3, %v1750_v45  ;;  %v4400_v45 = vld [vmem:[#allocation13 + $0x18] sm:$0xff] }
0x239d   :  { %3432 = vmatpush3.msra.mxu1 %v4229_v52  ;;  %3439 = vmatprep.mubr.msk.f32.mxu1 %vm3929_vm0, %v3928_v1 }
0x239e   :  { %3433 = vmatprep.subr.mxu1 %v3928_v1 }
0x239f   :  { %3434 = vmatpush3.msra.mxu1 %v4232_v53 }
0x23a0   :  { %3435 = vmatprep.subr.mxu1 %v3928_v1 }
0x23a1   :  { %3436 = vmatpush3.msra.mxu1 %v4235_v3 }
0x23a2   :  { %3437 = vmatprep.subr.mxu1 %v3928_v1 }
0x23a3   :  { %3438 = vmatpush3.msra.mxu1 %v4241_v55  ;;  %v1837_v55 = vrot.slane %v1741_v41, 6 }
0x23a4   :  { %3453 = vmatprep.subr.mxu1 %v3928_v1 }
0x245c   :  { %v1821_v46 = vpop.f32.mrf.mxu1 }
0x245d   :  { %v1826_v47 = vrot.slane %v1821_v46, 6  ;;  %v4403_v46 = vld [vmem:[#allocation13 + $0x10] sm:$0xff] }
0x245e   :  { %v3419_v52 = vpop.f32.mrf.mxu1 }
0x245f   :  { %v1828_v48 = vadd.f32 %v1826_v47, %v4273_v0  ;;  %v2086_v47 = vld [vmem:[#allocation12 + $0x8] sm:$0xff] }
0x2460   :  { %v4406_v52 = vld [vmem:[#allocation13 + $0x8] sm:$0xff] }
0x2461   :  { %3660 = vtanh.f32 %v1828_v48  ;;  %v3087_v53 = vmul.f32 -1.442695, %v1828_v48  ;;  %v4412_v48 = vld [vmem:[#allocation13] sm:$0xff] }
0x2463   :  { %3662 = vpow2.f32 %v3087_v53 }
0x246e   :  { %v3661_v49 = vpop.eup %3660 }
0x246f   :  { %1841 = vrot.lane.b32.xlu1 %v3661_v49, %s3930_s0 }
0x2470   :  { %v3663_v31 = vpop.eup %3662 }
0x2471   :  { %v1832_v50 = vadd.f32 1.0, %v3663_v31 }
0x2473   :  { %3664 = vrcp.f32 %v1832_v50 }
0x2480   :  { %v3665_v3 = vpop.eup %3664 }
0x2481   :  { %v1839_v10 = vmul.f32 %v3665_v3, %v1837_v55 }
0x24e1   :  { %v1842_v51 = vpop.permute.xlu1 %1841 }
0x24e2   :  { %v1844_v54 = vmul.f32 %v3665_v3, %v1842_v51 }
0x24e4   :  { %1846 = vrot.lane.b32.xlu0 %v1844_v54, %s3931_s2 }
0x2556   :  { %v1847_v56 = vpop.permute.xlu0 %1846 }
0x2557   :  { %v1849_v5 = vadd.f32 %v1847_v56, %v1839_v10  ;;  %v3092_v56 = vld [vmem:[#allocation15] ss:$0 sm:$0xff] }
0x2559   :  { %3666 = vtanh.f32 %v1849_v5  ;;  %v1948_v18 = vrot.slane %v1849_v5, 6 }
0x2566   :  { %v3667_v57 = vpop.eup %3666 }
0x2567   :  { %1852 = vrot.lane.b32.xlu1 %v3667_v57, %s3930_s0 }
0x25d9   :  { %v1853_v58 = vpop.permute.xlu1 %1852 }
0x25da   :  { %v4371_v8 = vmul.f32 %v3665_v3, %v1853_v58 }
0x25dc   :  { %v1861_v59 = vrot.slane %v4371_v8, 2 }
0x25de   :  { %1862 = vrot.lane.b32.xlu0 %v1861_v59, %s3931_s2 }
0x2650   :  { %v1863_v60 = vpop.permute.xlu0 %1862 }
0x2651   :  { %3429 = vmatmul.mubr.msk.f32.vlgmr.msra.gmra.mxu0 %vm241_vm3, %v1863_v60 }
0x2711   :  { %v1932_v61 = vpop.f32.mrf.mxu0 }
0x2712   :  { %v1937_v62 = vrot.slane %v1932_v61, 4 }
0x2713   :  { %v3430_v63 = vpop.f32.mrf.mxu0 }
0x2714   :  { %v1939_v2 = vadd.f32 %v1937_v62, %v4273_v0 }
0x2716   :  { %3668 = vtanh.f32 %v1939_v2  ;;  %v3089_v7 = vmul.f32 -1.442695, %v1939_v2 }
0x2718   :  { %3670 = vpow2.f32 %v3089_v7 }
0x2723   :  { %v3669_v6 = vpop.eup %3668 }
0x2724   :  { %1952 = vrot.lane.b32.xlu1 %v3669_v6, %s3930_s0 }
0x2725   :  { %v3671_v11 = vpop.eup %3670 }
0x2726   :  { %v1943_v13 = vadd.f32 1.0, %v3671_v11 }
0x2728   :  { %3672 = vrcp.f32 %v1943_v13 }
0x2735   :  { %v3673_v15 = vpop.eup %3672 }
0x2736   :  { %v1950_v19 = vmul.f32 %v3673_v15, %v1948_v18 }
0x2796   :  { %v1953_v16 = vpop.permute.xlu1 %1952 }
0x2797   :  { %v1955_v17 = vmul.f32 %v3673_v15, %v1953_v16 }
0x2799   :  { %1957 = vrot.lane.b32.xlu0 %v1955_v17, %s3931_s2 }
0x280b   :  { %v1958_v20 = vpop.permute.xlu0 %1957 }
0x280c   :  { %v1960_v21 = vadd.f32 %v1958_v20, %v1950_v19 }
0x280e   :  { %3674 = vtanh.f32 %v1960_v21 }
0x281b   :  { %v3675_v22 = vpop.eup %3674 }
0x281c   :  { %1963 = vrot.lane.b32.xlu1 %v3675_v22, %s3930_s0 }
0x288e   :  { %v1964_v23 = vpop.permute.xlu1 %1963 }
0x288f   :  { %v1966_v4 = vmul.f32 %v3673_v15, %v1964_v23 }
0x2891   :  { %v1972_v24 = vrot.slane %v1966_v4, 4 }
0x2893   :  { %1973 = vrot.lane.b32.xlu0 %v1972_v24, %s3931_s2 }
0x2905   :  { %v1974_v26 = vpop.permute.xlu0 %1973 }
0x2906   :  { %3440 = vmatmul.mubr.msk.f32.vlgmr.msra.gmra.mxu1 %vm241_vm3, %v1974_v26 }
0x2907   :  { %3461 = vmatprep.mubr.msk.f32.mxu1 %vm3929_vm0, %v3928_v1  ;;  %3454 = vmatpush3.msra.mxu1 %v4400_v45 }
0x2908   :  { %3455 = vmatprep.subr.mxu1 %v3928_v1 }
0x2909   :  { %3456 = vmatpush3.msra.mxu1 %v4403_v46 }
0x290a   :  { %3457 = vmatprep.subr.mxu1 %v3928_v1 }
0x290b   :  { %3458 = vmatpush3.msra.mxu1 %v4406_v52 }
0x290c   :  { %3459 = vmatprep.subr.mxu1 %v3928_v1 }
0x290d   :  { %3460 = vmatpush3.msra.mxu1 %v4412_v48 }
0x290e   :  { %3462 = vmatmul.mubr.f32.vlgmr.msra.gmra.mxu1 %v3928_v1  ;;  %3475 = vmatprep.subr.mxu1 %v3928_v1 }
0x290f   :  { %3476 = vmatpush3.msra.mxu1 %v4400_v45  ;;  %3483 = vmatprep.mubr.msk.f32.mxu1 %vm3929_vm0, %v3928_v1 }
0x2910   :  { %3477 = vmatprep.subr.mxu1 %v3928_v1 }
0x2911   :  { %3478 = vmatpush3.msra.mxu1 %v4403_v46 }
0x2912   :  { %3479 = vmatprep.subr.mxu1 %v3928_v1 }
0x2913   :  { %3480 = vmatpush3.msra.mxu1 %v4406_v52 }
0x2914   :  { %3481 = vmatprep.subr.mxu1 %v3928_v1 }
0x2915   :  { %3482 = vmatpush3.msra.mxu1 %v4412_v48 }
0x2916   :  { %3497 = vmatprep.subr.mxu1 %v3928_v1 }
0x29c6   :  { %v2043_v27 = vpop.f32.mrf.mxu1 }
0x29c7   :  { %v2048_v28 = vrot.slane %v2043_v27, 2 }
0x29c8   :  { %v3441_v29 = vpop.f32.mrf.mxu1 }
0x29c9   :  { %v2050_v14 = vadd.f32 %v2048_v28, %v4273_v0  ;;  %v2059_v0 = vrot.slane %v1960_v21, 6 }
0x29cb   :  { %3676 = vtanh.f32 %v2050_v14  ;;  %v3091_v32 = vmul.f32 -1.442695, %v2050_v14 }
0x29cd   :  { %3678 = vpow2.f32 %v3091_v32 }
0x29ce   :  { %v2247_v55 = vpop.f32.mrf.mxu1 }
0x29d0   :  { %v3463_v10 = vpop.f32.mrf.mxu1 }
0x29d8   :  { %v3677_v30 = vpop.eup %3676 }
0x29d9   :  { %2063 = vrot.lane.b32.xlu1 %v3677_v30, %s3930_s0 }
0x29da   :  { %v3679_v33 = vpop.eup %3678 }
0x29db   :  { %v2054_v34 = vadd.f32 1.0, %v3679_v33 }
0x29dd   :  { %3680 = vrcp.f32 %v2054_v34 }
0x29ea   :  { %v3681_v35 = vpop.eup %3680 }
0x29eb   :  { %v2061_v38 = vmul.f32 %v3681_v35, %v2059_v0 }
0x2a4b   :  { %v2064_v36 = vpop.permute.xlu1 %2063 }
0x2a4c   :  { %v2066_v37 = vmul.f32 %v3681_v35, %v2064_v36 }
0x2a4e   :  { %2068 = vrot.lane.b32.xlu0 %v2066_v37, %s3931_s2 }
0x2a52   :  { %1419 = vrot.lane.b32.xlu0 %v4298_v43, %s3931_s2 }
0x2a56   :  { %1641 = vrot.lane.b32.xlu0 %v4336_v25, %s3931_s2  ;;  %v2088_v25 = vld [vmem:[#allocation12 + $0x18] sm:$0xff] }
0x2a57   :  { %3442 = vmatprep.subr.mxu0 %v2088_v25 }
0x2a58   :  { %3443 = vmatpush3.msra.mxu0 %v2088_v25 }
0x2a59   :  { %3444 = vmatprep.subr.mxu0 %v2087_v44 }
0x2a5a   :  { %1968 = vrot.lane.b32.xlu0 %v1966_v4, %s3931_s2  ;;  %3445 = vmatpush3.msra.mxu0 %v2087_v44 }
0x2a5b   :  { %3446 = vmatprep.subr.mxu0 %v2086_v47 }
0x2a5c   :  { %3447 = vmatpush3.msra.mxu0 %v2086_v47 }
0x2ac0   :  { %v2069_v39 = vpop.permute.xlu0 %2068 }
0x2ac1   :  { %v2071_v40 = vadd.f32 %v2069_v39, %v2061_v38 }
0x2ac3   :  { %3682 = vtanh.f32 %v2071_v40 }
0x2ac4   :  { %v1420_v41 = vpop.permute.xlu0 %1419 }
0x2ac5   :  { %1422 = vst.msk [vmem:[#allocation3] sm:$0xc] %vm453_vm4, %v1420_v41 }
0x2ac8   :  { %v1642_v42 = vpop.permute.xlu0 %1641 }
0x2ac9   :  { %1644 = vst.msk [vmem:[#allocation3] sm:$0xc0] %vm677_vm5, %v1642_v42 }
0x2acc   :  { %v1969_v12 = vpop.permute.xlu0 %1968 }
0x2acd   :  { %1971 = vst.msk [vmem:[#allocation3 + $0x8] sm:$0x30] %vm565_vm6, %v1969_v12 }
0x2ad0   :  { %v3683_v43 = vpop.eup %3682 }
0x2ad1   :  { %2074 = vrot.lane.b32.xlu1 %v3683_v43, %s3930_s0 }
0x2ad5   :  { %1530 = vrot.lane.b32.xlu1 %v4317_v9, %s3931_s2  ;;  %v2085_v9 = vld [vmem:[#allocation12] sm:$0xff] }
0x2ad6   :  { %3448 = vmatprep.subr.mxu0 %v2085_v9 }
0x2ad7   :  { %3449 = vmatpush3.msra.mxu0 %v2085_v9 }
0x2ad8   :  { %3464 = vmatprep.subr.mxu0 %v3928_v1 }
0x2ad9   :  { %1857 = vrot.lane.b32.xlu1 %v4371_v8, %s3931_s2 }
0x2b43   :  { %v2075_v49 = vpop.permute.xlu1 %2074 }
0x2b44   :  { %v2077_v53 = vmul.f32 %v3681_v35, %v2075_v49 }
0x2b46   :  { %2079 = vrot.lane.b32.xlu1 %v2077_v53, %s3931_s2 }
0x2b47   :  { %v1531_v31 = vpop.permute.xlu1 %1530 }
0x2b48   :  { %1533 = vst.msk [vmem:[#allocation3] sm:$0x30] %vm565_vm6, %v1531_v31 }
0x2b4b   :  { %v1858_v50 = vpop.permute.xlu1 %1857 }
0x2b4c   :  { %1860 = vst.msk [vmem:[#allocation3 + $0x8] sm:$0xc] %vm453_vm4, %v1858_v50 }
0x2b4f   :  { %v2083_v3 = vld [vmem:[#allocation3] sm:$0xff] }
0x2b50   :  { %3450 = vmatprep.mubr.msk.f32.mxu0 %vm241_vm3, %v2083_v3 }
0x2bb8   :  { %v2080_v51 = vpop.permute.xlu1 %2079 }
0x2bb9   :  { %2082 = vst.msk [vmem:[#allocation3 + $0x8] sm:$0xc0] %vm677_vm5, %v2080_v51 }
0x2bc0   :  { %v2084_v54 = vld [vmem:[#allocation3 + $0x8] sm:$0xff] }
0x2bc1   :  { %3451 = vmatmul.mubr.msk.f32.vlgmr.msra.gmra.mxu0 %vm241_vm3, %v2084_v54 }
0x2bc2   :  { %3465 = vmatpush3.msra.mxu0 %v4400_v45  ;;  %3472 = vmatprep.mubr.msk.f32.mxu0 %vm3929_vm0, %v3928_v1 }
0x2bc3   :  { %3466 = vmatprep.subr.mxu0 %v3928_v1 }
0x2bc4   :  { %3467 = vmatpush3.msra.mxu0 %v4403_v46 }
0x2bc5   :  { %3468 = vmatprep.subr.mxu0 %v3928_v1 }
0x2bc6   :  { %3469 = vmatpush3.msra.mxu0 %v4406_v52 }
0x2bc7   :  { %3470 = vmatprep.subr.mxu0 %v3928_v1 }
0x2bc8   :  { %3471 = vmatpush3.msra.mxu0 %v4412_v48 }
0x2bc9   :  { %3486 = vmatprep.subr.mxu0 %v3928_v1 }
0x2c81   :  { %v3452_v5 = vpop.f32.mrf.mxu0 }
0x2c82   :  { %v4444_v57 = vadd.f32 %v3452_v5, %v3092_v56 }
0x2c83   :  { %v2172_v58 = vpop.f32.mrf.mxu0 }
0x2c84   :  { %v4446_v8 = vadd.f32 %v3092_v56, %v2172_v58 }
0x2c86   :  { %v2251_v59 = vadd.f32 %v2247_v55, %v4446_v8 }
0x2c88   :  { %3684 = vtanh.f32 %v2251_v59  ;;  %v3095_v61 = vmul.f32 -1.442695, %v2251_v59 }
0x2c8a   :  { %3686 = vpow2.f32 %v3095_v61 }
0x2c95   :  { %v3685_v60 = vpop.eup %3684 }
0x2c96   :  { %2261 = vrot.lane.b32.xlu0 %v3685_v60, %s3930_s0 }
0x2c97   :  { %v3687_v62 = vpop.eup %3686 }
0x2c98   :  { %v2255_v63 = vadd.f32 1.0, %v3687_v62 }
0x2c9a   :  { %3688 = vrcp.f32 %v2255_v63 }
0x2ca7   :  { %v3689_v2 = vpop.eup %3688 }
0x2ca8   :  { %v2259_v11 = vmul.f32 0.0, %v3689_v2 }
0x2d08   :  { %v2262_v6 = vpop.permute.xlu0 %2261 }
0x2d09   :  { %v2264_v7 = vmul.f32 %v3689_v2, %v2262_v6 }
0x2d0b   :  { %2266 = vrot.lane.b32.xlu1 %v2264_v7, %s3931_s2 }
0x2d7d   :  { %v2267_v13 = vpop.permute.xlu1 %2266 }
0x2d7e   :  { %v2269_v15 = vadd.f32 %v2267_v13, %v2259_v11 }
0x2d80   :  { %3690 = vtanh.f32 %v2269_v15  ;;  %v2363_v30 = vrot.slane %v2269_v15, 6 }
0x2d8d   :  { %v3691_v16 = vpop.eup %3690 }
0x2d8e   :  { %2272 = vrot.lane.b32.xlu0 %v3691_v16, %s3930_s0 }
0x2e00   :  { %v2273_v17 = vpop.permute.xlu0 %2272 }
0x2e01   :  { %v2275_v18 = vmul.f32 %v3689_v2, %v2273_v17 }
0x2e03   :  { %2277 = vrot.lane.b32.xlu1 %v2275_v18, %s3931_s2 }
0x2e75   :  { %v2278_v19 = vpop.permute.xlu1 %2277 }
0x2e76   :  { %3473 = vmatmul.mubr.msk.f32.vlgmr.msra.gmra.mxu0 %vm241_vm3, %v2278_v19 }
0x2e77   :  { %3487 = vmatpush3.msra.mxu0 %v4400_v45  ;;  %3494 = vmatprep.mubr.msk.f32.mxu0 %vm3929_vm0, %v3928_v1 }
0x2e78   :  { %3488 = vmatprep.subr.mxu0 %v3928_v1 }
0x2e79   :  { %3489 = vmatpush3.msra.mxu0 %v4403_v46 }
0x2e7a   :  { %3490 = vmatprep.subr.mxu0 %v3928_v1 }
0x2e7b   :  { %3491 = vmatpush3.msra.mxu0 %v4406_v52 }
0x2e7c   :  { %3492 = vmatprep.subr.mxu0 %v3928_v1 }
0x2e7d   :  { %3493 = vmatpush3.msra.mxu0 %v4412_v48 }
0x2e7e   :  { %3508 = vmatprep.subr.mxu0 %v3928_v1 }
0x2f36   :  { %v2347_v20 = vpop.f32.mrf.mxu0 }
0x2f37   :  { %v2352_v21 = vrot.slane %v2347_v20, 6 }
0x2f38   :  { %v3474_v22 = vpop.f32.mrf.mxu0 }
0x2f39   :  { %v2354_v23 = vadd.f32 %v2352_v21, %v4446_v8 }
0x2f3b   :  { %3692 = vtanh.f32 %v2354_v23  ;;  %v3097_v24 = vmul.f32 -1.442695, %v2354_v23 }
0x2f3d   :  { %3694 = vpow2.f32 %v3097_v24 }
0x2f48   :  { %v3693_v4 = vpop.eup %3692 }
0x2f49   :  { %2367 = vrot.lane.b32.xlu0 %v3693_v4, %s3930_s0 }
0x2f4a   :  { %v3695_v26 = vpop.eup %3694 }
0x2f4b   :  { %v2358_v27 = vadd.f32 1.0, %v3695_v26 }
0x2f4d   :  { %3696 = vrcp.f32 %v2358_v27 }
0x2f5a   :  { %v3697_v28 = vpop.eup %3696 }
0x2f5b   :  { %v2365_v32 = vmul.f32 %v3697_v28, %v2363_v30 }
0x2fbb   :  { %v2368_v29 = vpop.permute.xlu0 %2367 }
0x2fbc   :  { %v2370_v14 = vmul.f32 %v3697_v28, %v2368_v29 }
0x2fbe   :  { %2372 = vrot.lane.b32.xlu1 %v2370_v14, %s3931_s2 }
0x3030   :  { %v2373_v33 = vpop.permute.xlu1 %2372 }
0x3031   :  { %v2375_v34 = vadd.f32 %v2373_v33, %v2365_v32 }
0x3033   :  { %3698 = vtanh.f32 %v2375_v34  ;;  %v2470_v53 = vrot.slane %v2375_v34, 6 }
0x3040   :  { %v3699_v35 = vpop.eup %3698 }
0x3041   :  { %2378 = vrot.lane.b32.xlu0 %v3699_v35, %s3930_s0 }
0x30b3   :  { %v2379_v36 = vpop.permute.xlu0 %2378 }
0x30b4   :  { %v2381_v37 = vmul.f32 %v3697_v28, %v2379_v36 }
0x30b6   :  { %v2383_v0 = vrot.slane %v2381_v37, 2 }
0x30b8   :  { %2384 = vrot.lane.b32.xlu1 %v2383_v0, %s3931_s2 }
0x312a   :  { %v2385_v38 = vpop.permute.xlu1 %2384 }
0x312b   :  { %3484 = vmatmul.mubr.msk.f32.vlgmr.msra.gmra.mxu1 %vm241_vm3, %v2385_v38 }
0x312c   :  { %3498 = vmatpush3.msra.mxu1 %v4400_v45  ;;  %3505 = vmatprep.mubr.msk.f32.mxu1 %vm3929_vm0, %v3928_v1 }
0x312d   :  { %3499 = vmatprep.subr.mxu1 %v3928_v1 }
0x312e   :  { %3500 = vmatpush3.msra.mxu1 %v4403_v46 }
0x312f   :  { %3501 = vmatprep.subr.mxu1 %v3928_v1 }
0x3130   :  { %3502 = vmatpush3.msra.mxu1 %v4406_v52 }
0x3131   :  { %3503 = vmatprep.subr.mxu1 %v3928_v1 }
0x3132   :  { %3504 = vmatpush3.msra.mxu1 %v4412_v48 }
0x3133   :  { %3519 = vmatprep.subr.mxu1 %v3928_v1 }
0x31eb   :  { %v2454_v39 = vpop.f32.mrf.mxu1 }
0x31ec   :  { %v2459_v40 = vrot.slane %v2454_v39, 4 }
0x31ed   :  { %v3485_v41 = vpop.f32.mrf.mxu1 }
0x31ee   :  { %v2461_v42 = vadd.f32 %v2459_v40, %v4446_v8 }
0x31f0   :  { %3700 = vtanh.f32 %v2461_v42  ;;  %v3099_v43 = vmul.f32 -1.442695, %v2461_v42 }
0x31f2   :  { %3702 = vpow2.f32 %v3099_v43 }
0x31fd   :  { %v3701_v12 = vpop.eup %3700 }
0x31fe   :  { %2474 = vrot.lane.b32.xlu0 %v3701_v12, %s3930_s0 }
0x31ff   :  { %v3703_v25 = vpop.eup %3702 }
0x3200   :  { %v2465_v44 = vadd.f32 1.0, %v3703_v25 }
0x3202   :  { %3704 = vrcp.f32 %v2465_v44 }
0x320f   :  { %v3705_v47 = vpop.eup %3704 }
0x3210   :  { %v2472_v31 = vmul.f32 %v3705_v47, %v2470_v53 }
0x3270   :  { %v2475_v9 = vpop.permute.xlu0 %2474 }
0x3271   :  { %v2477_v49 = vmul.f32 %v3705_v47, %v2475_v9 }
0x3273   :  { %2479 = vrot.lane.b32.xlu1 %v2477_v49, %s3931_s2 }
0x32e5   :  { %v2480_v50 = vpop.permute.xlu1 %2479 }
0x32e6   :  { %v2482_v3 = vadd.f32 %v2480_v50, %v2472_v31 }
0x32e8   :  { %3706 = vtanh.f32 %v2482_v3  ;;  %v2577_v13 = vrot.slane %v2482_v3, 6 }
0x32f5   :  { %v3707_v51 = vpop.eup %3706 }
0x32f6   :  { %2485 = vrot.lane.b32.xlu0 %v3707_v51, %s3930_s0 }
0x3368   :  { %v2486_v54 = vpop.permute.xlu0 %2485 }
0x3369   :  { %v2488_v55 = vmul.f32 %v3705_v47, %v2486_v54 }
0x336b   :  { %v2490_v10 = vrot.slane %v2488_v55, 4 }
0x336d   :  { %2491 = vrot.lane.b32.xlu1 %v2490_v10, %s3931_s2 }
0x33df   :  { %v2492_v56 = vpop.permute.xlu1 %2491 }
0x33e0   :  { %3495 = vmatmul.mubr.msk.f32.vlgmr.msra.gmra.mxu0 %vm241_vm3, %v2492_v56 }
0x33e1   :  { %3509 = vmatpush3.msra.mxu0 %v4400_v45  ;;  %3516 = vmatprep.mubr.msk.f32.mxu0 %vm3929_vm0, %v3928_v1 }
0x33e2   :  { %3510 = vmatprep.subr.mxu0 %v3928_v1 }
0x33e3   :  { %3511 = vmatpush3.msra.mxu0 %v4403_v46 }
0x33e4   :  { %3512 = vmatprep.subr.mxu0 %v3928_v1 }
0x33e5   :  { %3513 = vmatpush3.msra.mxu0 %v4406_v52 }
0x33e6   :  { %3514 = vmatprep.subr.mxu0 %v3928_v1 }
0x33e7   :  { %3515 = vmatpush3.msra.mxu0 %v4412_v48 }
0x33e8   :  { %3530 = vmatprep.subr.mxu0 %v3928_v1 }
0x34a0   :  { %v2561_v5 = vpop.f32.mrf.mxu0 }
0x34a1   :  { %v2566_v58 = vrot.slane %v2561_v5, 2 }
0x34a2   :  { %v3496_v59 = vpop.f32.mrf.mxu0 }
0x34a3   :  { %v2568_v60 = vadd.f32 %v2566_v58, %v4446_v8 }
0x34a5   :  { %3708 = vtanh.f32 %v2568_v60  ;;  %v3101_v62 = vmul.f32 -1.442695, %v2568_v60 }
0x34a7   :  { %3710 = vpow2.f32 %v3101_v62 }
0x34b2   :  { %v3709_v61 = vpop.eup %3708 }
0x34b3   :  { %2581 = vrot.lane.b32.xlu0 %v3709_v61, %s3930_s0 }
0x34b4   :  { %v3711_v63 = vpop.eup %3710 }
0x34b5   :  { %v2572_v2 = vadd.f32 1.0, %v3711_v63 }
0x34b7   :  { %3712 = vrcp.f32 %v2572_v2 }
0x34c4   :  { %v3713_v6 = vpop.eup %3712 }
0x34c5   :  { %v2579_v15 = vmul.f32 %v3713_v6, %v2577_v13 }
0x3525   :  { %v2582_v7 = vpop.permute.xlu0 %2581 }
0x3526   :  { %v2584_v11 = vmul.f32 %v3713_v6, %v2582_v7 }
0x3528   :  { %2586 = vrot.lane.b32.xlu1 %v2584_v11, %s3931_s2 }
0x359a   :  { %v2587_v16 = vpop.permute.xlu1 %2586 }
0x359b   :  { %v2589_v17 = vadd.f32 %v2587_v16, %v2579_v15 }
0x359d   :  { %3714 = vtanh.f32 %v2589_v17  ;;  %v2681_v32 = vrot.slane %v2589_v17, 6 }
0x35aa   :  { %v3715_v8 = vpop.eup %3714 }
0x35ab   :  { %2592 = vrot.lane.b32.xlu0 %v3715_v8, %s3930_s0 }
0x361d   :  { %v2593_v18 = vpop.permute.xlu0 %2592 }
0x361e   :  { %v2595_v19 = vmul.f32 %v3713_v6, %v2593_v18 }
0x3620   :  { %v2597_v20 = vrot.slane %v2595_v19, 6 }
0x3622   :  { %2598 = vrot.lane.b32.xlu1 %v2597_v20, %s3931_s2 }
0x3694   :  { %v2599_v21 = vpop.permute.xlu1 %2598 }
0x3695   :  { %3506 = vmatmul.mubr.msk.f32.vlgmr.msra.gmra.mxu1 %vm241_vm3, %v2599_v21 }
0x3696   :  { %3520 = vmatpush3.msra.mxu1 %v4400_v45  ;;  %3527 = vmatprep.mubr.msk.f32.mxu1 %vm3929_vm0, %v3928_v1 }
0x3697   :  { %3521 = vmatprep.subr.mxu1 %v3928_v1 }
0x3698   :  { %3522 = vmatpush3.msra.mxu1 %v4403_v46 }
0x3699   :  { %3523 = vmatprep.subr.mxu1 %v3928_v1 }
0x369a   :  { %3524 = vmatpush3.msra.mxu1 %v4406_v52 }
0x369b   :  { %3525 = vmatprep.subr.mxu1 %v3928_v1 }
0x369c   :  { %3526 = vmatpush3.msra.mxu1 %v4412_v48 }
0x3755   :  { %v2668_v22 = vpop.f32.mrf.mxu1 }
0x3756   :  { %v2672_v23 = vadd.f32 %v2668_v22, %v4444_v57 }
0x3757   :  { %v3507_v4 = vpop.f32.mrf.mxu1 }
0x3758   :  { %3716 = vtanh.f32 %v2672_v23  ;;  %v3103_v26 = vmul.f32 -1.442695, %v2672_v23 }
0x375a   :  { %3718 = vpow2.f32 %v3103_v26 }
0x3765   :  { %v3717_v24 = vpop.eup %3716 }
0x3766   :  { %2685 = vrot.lane.b32.xlu0 %v3717_v24, %s3930_s0 }
0x3767   :  { %v3719_v27 = vpop.eup %3718 }
0x3768   :  { %v2676_v28 = vadd.f32 1.0, %v3719_v27 }
0x376a   :  { %3720 = vrcp.f32 %v2676_v28  ;;  %v3110_v28 = vld [vmem:[#allocation16] ss:$0 sm:$0xff] }
0x3777   :  { %v3721_v29 = vpop.eup %3720 }
0x3778   :  { %v2683_v33 = vmul.f32 %v3721_v29, %v2681_v32 }
0x37d8   :  { %v2686_v14 = vpop.permute.xlu0 %2685 }
0x37d9   :  { %v2688_v30 = vmul.f32 %v3721_v29, %v2686_v14 }
0x37db   :  { %2690 = vrot.lane.b32.xlu1 %v2688_v30, %s3931_s2 }
0x384d   :  { %v2691_v34 = vpop.permute.xlu1 %2690 }
0x384e   :  { %v2693_v35 = vadd.f32 %v2691_v34, %v2683_v33 }
0x3850   :  { %3722 = vtanh.f32 %v2693_v35 }
0x385d   :  { %v3723_v36 = vpop.eup %3722 }
0x385e   :  { %2696 = vrot.lane.b32.xlu0 %v3723_v36, %s3930_s0 }
0x38d0   :  { %v2697_v37 = vpop.permute.xlu0 %2696 }
0x38d1   :  { %v2699_v0 = vmul.f32 %v3721_v29, %v2697_v37 }
0x38d3   :  { %2701 = vrot.lane.b32.xlu1 %v2699_v0, %s3931_s2 }
0x3945   :  { %v2702_v38 = vpop.permute.xlu1 %2701 }
0x3946   :  { %3517 = vmatmul.mubr.msk.f32.vlgmr.msra.gmra.mxu0 %vm241_vm3, %v2702_v38  ;;  %v3111_v38 = vld [vmem:[#allocation4] ss:$0 sm:$0xff] }
0x3947   :  { %3531 = vmatpush3.msra.mxu0 %v4400_v45  ;;  %3538 = vmatprep.mubr.msk.f32.mxu0 %vm3929_vm0, %v3928_v1 }
0x3948   :  { %3532 = vmatprep.subr.mxu0 %v3928_v1 }
0x3949   :  { %3533 = vmatpush3.msra.mxu0 %v4403_v46 }
0x394a   :  { %3534 = vmatprep.subr.mxu0 %v3928_v1 }
0x394b   :  { %3535 = vmatpush3.msra.mxu0 %v4406_v52 }
0x394c   :  { %3536 = vmatprep.subr.mxu0 %v3928_v1  ;;  %v2787_v1 = vrot.slane %v2693_v35, 6 }
0x394d   :  { %3537 = vmatpush3.msra.mxu0 %v4412_v48 }
0x3a06   :  { %v2771_v39 = vpop.f32.mrf.mxu0 }
0x3a07   :  { %v2776_v40 = vrot.slane %v2771_v39, 6 }
0x3a08   :  { %v3518_v41 = vpop.f32.mrf.mxu0 }
0x3a09   :  { %v2778_v45 = vadd.f32 %v2776_v40, %v4444_v57 }
0x3a0b   :  { %3724 = vtanh.f32 %v2778_v45  ;;  %v3105_v12 = vmul.f32 -1.442695, %v2778_v45 }
0x3a0d   :  { %3726 = vpow2.f32 %v3105_v12 }
0x3a18   :  { %v3725_v42 = vpop.eup %3724 }
0x3a19   :  { %2791 = vrot.lane.b32.xlu0 %v3725_v42, %s3930_s0 }
0x3a1a   :  { %v3727_v46 = vpop.eup %3726 }
0x3a1b   :  { %v2782_v43 = vadd.f32 1.0, %v3727_v46 }
0x3a1d   :  { %3728 = vrcp.f32 %v2782_v43 }
0x3a2a   :  { %v3729_v25 = vpop.eup %3728 }
0x3a2b   :  { %v2789_v48 = vmul.f32 %v3729_v25, %v2787_v1 }
0x3a8b   :  { %v2792_v52 = vpop.permute.xlu0 %2791 }
0x3a8c   :  { %v2794_v44 = vmul.f32 %v3729_v25, %v2792_v52 }
0x3a8e   :  { %2796 = vrot.lane.b32.xlu1 %v2794_v44, %s3931_s2 }
0x3b00   :  { %v2797_v47 = vpop.permute.xlu1 %2796 }
0x3b01   :  { %v2799_v9 = vadd.f32 %v2797_v47, %v2789_v48 }
0x3b03   :  { %3730 = vtanh.f32 %v2799_v9  ;;  %v2894_v63 = vrot.slane %v2799_v9, 6 }
0x3b10   :  { %v3731_v49 = vpop.eup %3730 }
0x3b11   :  { %2802 = vrot.lane.b32.xlu0 %v3731_v49, %s3930_s0 }
0x3b83   :  { %v2803_v53 = vpop.permute.xlu0 %2802 }
0x3b84   :  { %v2805_v31 = vmul.f32 %v3729_v25, %v2803_v53 }
0x3b86   :  { %v2807_v50 = vrot.slane %v2805_v31, 2 }
0x3b88   :  { %2808 = vrot.lane.b32.xlu1 %v2807_v50, %s3931_s2 }
0x3bfa   :  { %v2809_v3 = vpop.permute.xlu1 %2808 }
0x3bfb   :  { %3528 = vmatmul.mubr.msk.f32.vlgmr.msra.gmra.mxu1 %vm241_vm3, %v2809_v3 }
0x3cbb   :  { %v2878_v51 = vpop.f32.mrf.mxu1 }
0x3cbc   :  { %v2883_v54 = vrot.slane %v2878_v51, 4 }
0x3cbd   :  { %v3529_v55 = vpop.f32.mrf.mxu1 }
0x3cbe   :  { %v2885_v10 = vadd.f32 %v2883_v54, %v4444_v57 }
0x3cc0   :  { %3732 = vtanh.f32 %v2885_v10  ;;  %v3107_v5 = vmul.f32 -1.442695, %v2885_v10 }
0x3cc2   :  { %3734 = vpow2.f32 %v3107_v5 }
0x3ccd   :  { %v3733_v56 = vpop.eup %3732 }
0x3cce   :  { %2898 = vrot.lane.b32.xlu0 %v3733_v56, %s3930_s0 }
0x3ccf   :  { %v3735_v58 = vpop.eup %3734 }
0x3cd0   :  { %v2889_v59 = vadd.f32 1.0, %v3735_v58 }
0x3cd2   :  { %3736 = vrcp.f32 %v2889_v59 }
0x3cdf   :  { %v3737_v60 = vpop.eup %3736 }
0x3ce0   :  { %v2896_v2 = vmul.f32 %v3737_v60, %v2894_v63 }
0x3d40   :  { %v2899_v61 = vpop.permute.xlu0 %2898 }
0x3d41   :  { %v2901_v62 = vmul.f32 %v3737_v60, %v2899_v61 }
0x3d43   :  { %2903 = vrot.lane.b32.xlu1 %v2901_v62, %s3931_s2 }
0x3db5   :  { %v2904_v6 = vpop.permute.xlu1 %2903 }
0x3db6   :  { %v2906_v7 = vadd.f32 %v2904_v6, %v2896_v2 }
0x3db8   :  { %3738 = vtanh.f32 %v2906_v7  ;;  %v3001_v29 = vrot.slane %v2906_v7, 6 }
0x3dc5   :  { %v3739_v11 = vpop.eup %3738 }
0x3dc6   :  { %2909 = vrot.lane.b32.xlu0 %v3739_v11, %s3930_s0 }
0x3e38   :  { %v2910_v13 = vpop.permute.xlu0 %2909 }
0x3e39   :  { %v2912_v15 = vmul.f32 %v3737_v60, %v2910_v13 }
0x3e3b   :  { %v2914_v16 = vrot.slane %v2912_v15, 4 }
0x3e3d   :  { %2915 = vrot.lane.b32.xlu1 %v2914_v16, %s3931_s2 }
0x3eaf   :  { %v2916_v17 = vpop.permute.xlu1 %2915 }
0x3eb0   :  { %3539 = vmatmul.mubr.msk.f32.vlgmr.msra.gmra.mxu0 %vm241_vm3, %v2916_v17 }
0x3f70   :  { %v2985_v8 = vpop.f32.mrf.mxu0 }
0x3f71   :  { %v2990_v18 = vrot.slane %v2985_v8, 2 }
0x3f72   :  { %v3540_v19 = vpop.f32.mrf.mxu0 }
0x3f73   :  { %v2992_v20 = vadd.f32 %v2990_v18, %v4444_v57 }
0x3f75   :  { %3740 = vtanh.f32 %v2992_v20  ;;  %v3109_v22 = vmul.f32 -1.442695, %v2992_v20 }
0x3f77   :  { %3742 = vpow2.f32 %v3109_v22 }
0x3f82   :  { %v3741_v21 = vpop.eup %3740 }
0x3f83   :  { %3005 = vrot.lane.b32.xlu0 %v3741_v21, %s3930_s0 }
0x3f84   :  { %v3743_v23 = vpop.eup %3742 }
0x3f85   :  { %v2996_v4 = vadd.f32 1.0, %v3743_v23 }
0x3f87   :  { %3744 = vrcp.f32 %v2996_v4 }
0x3f94   :  { %v3745_v24 = vpop.eup %3744 }
0x3f95   :  { %v3003_v14 = vmul.f32 %v3745_v24, %v3001_v29 }
0x3ff5   :  { %v3006_v26 = vpop.permute.xlu0 %3005 }
0x3ff6   :  { %v3008_v27 = vmul.f32 %v3745_v24, %v3006_v26 }
0x3ff8   :  { %3010 = vrot.lane.b32.xlu1 %v3008_v27, %s3931_s2 }
0x3ffc   :  { %3026 = vrot.lane.b32.xlu1 %v3110_v28, %s3932_s17 }
0x406a   :  { %v3011_v57 = vpop.permute.xlu1 %3010 }
0x406b   :  { %v3013_v30 = vadd.f32 %v3011_v57, %v3003_v14 }
0x406d   :  { %3746 = vtanh.f32 %v3013_v30 }
0x406e   :  { %v3027_v34 = vpop.permute.xlu1 %3026 }
0x407a   :  { %v3747_v32 = vpop.eup %3746 }
0x407b   :  { %3016 = vrot.lane.b32.xlu0 %v3747_v32, %s3930_s0 }
0x40ed   :  { %v3017_v33 = vpop.permute.xlu0 %3016 }
0x40ee   :  { %v3019_v35 = vmul.f32 %v3745_v24, %v3017_v33 }
0x40f0   :  { %v3029_v36 = vmul.f32 %v3027_v34, %v3019_v35 }
0x40f2   :  { %3031 = vrot.lane.b32.xlu0 %v3029_v36, %s3931_s2 }
0x4164   :  { %v3032_v37 = vpop.permute.xlu0 %3031 }
0x4165   :  { %v3034_v0 = vsel %vm677_vm5, %v3032_v37, 0.0 }
0x4166   :  { %3035 = vadd.xlane.f32.xlu1 %v3034_v0 }
0x41ef   :  { %v3036_v39 = vpop.xlane.xlu1 %3035 }
0x41f0   :  { %v3044_v40 = vadd.f32 %v3111_v38, %v3036_v39 }
0x41f2   :  { %3046 = vst.msk [vmem:[%s4559_s12 - $0x6] sm:$0xc0] %vm3045_vm7, %v3044_v40 }
0x41f3   :  { %3051 = vsyncpa [#allocation6], 1 }
0x41f4   :  { %3052 = vsyncpa [#allocation8], 1 }
0x41f5   :  { %3053 = vsyncpa [#allocation11], 1 }
0x41f6   :  { %3054 = vsyncpa [#allocation14], 1 }
0x41f7   :  { %3055 = vsyncpa [#allocation17], 1 }

</bundles_post_ra>
